<compile_context>
chip_gen: v7x
topology: tpu7x:2x2x1
jax: 0.10.0
libtpu: 0.0.40
codegen_flags: <defaults>
</compile_context>

<pallas_src>
import functools

import jax
import jax.numpy as jnp
import numpy as np
from jax import lax
from jax.experimental import pallas as pl
from jax.experimental.pallas import tpu as pltpu

BN_EPS = 1e-5


def _rotate_rows(x, shift):
    """out[row] = x[(row + shift) % rows]; static sublane rotation via slices."""
    rows = x.shape[0]
    s = shift % rows
    if s == 0:
        return x
    return jnp.concatenate([x[s:], x[:s]], axis=0)


def stgcn_kernel(x_ref, w1_ref, b1_ref, w2_ref, b2_ref, g_ref, bb_ref, out_ref,
                 *, n, t, v, cout, vlo, pad_t, kt):
    # x_ref:  (N*T, V*Cin)                lane-dense input
    # w1_ref: (V*Cin, V*Cout)             banded spatial weight (V padding absorbed)
    # b1_ref: (1, V*Cout)                 spatial bias tiled over V
    # w2_ref: (Kt*Vlo*Cout, Vlo*Cout)     Kt-stacked small block-diagonal temporal weight
    # b2_ref: (1, Vlo*Cout)               temporal bias tiled over Vlo
    # g_ref / bb_ref: (1, V*Cout)         BN gamma / beta tiled over V
    # out_ref: (N*T, V*Cout)              lane-dense output slab
    vhi = v // vlo
    vc = v * cout
    lanes = vlo * cout        # temporal-matmul lane width
    blk = n * t               # rows per V_hi block
    rows = vhi * blk          # temporal-matmul M

    # ---- spatial conv (1 x Ks) + bias + ReLU: single banded matmul ----
    y1 = jnp.dot(x_ref[...], w1_ref[...], preferred_element_type=jnp.float32)
    y1 = jnp.maximum(y1 + b1_ref[...], 0.0)                        # (N*T, V*Cout)

    # ---- repack (N*T, V*Cout) -> (Vhi*N*T, Vlo*Cout): V_hi moves to rows ----
    # Only static lane slices + sublane concatenation (no minor-dim reshape).
    y1v = jnp.concatenate(
        [y1[:, h * lanes:(h + 1) * lanes] for h in range(vhi)], axis=0)

    # Per-row temporal index (rows ordered (vhi, n, t); blk and n*T are multiples of T).
    tpos = lax.broadcasted_iota(jnp.int32, (rows, lanes), 0) % t

    # ---- temporal conv (Kt x 1): im2col in vregs + ONE long-K MXU matmul ----
    cols = []
    for k in range(kt):
        d = k - pad_t                                  # temporal offset of this tap
        if d == 0:
            cols.append(y1v)
            continue
        shifted = _rotate_rows(y1v, d)                 # shift by d T-steps (1 row/step)
        valid = (tpos + d >= 0) & (tpos + d < t)       # zero padding / batch boundaries
        cols.append(jnp.where(valid, shifted, 0.0))
    z = jnp.concatenate(cols, axis=1)                  # (rows, Kt*Vlo*Cout)

    y2v = jnp.dot(z, w2_ref[...], preferred_element_type=jnp.float32)
    y2v = jnp.maximum(y2v + b2_ref[...], 0.0)          # (rows, Vlo*Cout)

    # ---- repack back to lane-dense (N*T, V*Cout) ----
    y2 = jnp.concatenate(
        [y2v[h * blk:(h + 1) * blk, :] for h in range(vhi)], axis=1)

    # ---- BatchNorm2d, fused (training-mode batch stats, biased variance) ----
    # Per-channel reduction over the V lane groups: log2(V) roll-add tree (XLU);
    # the result is already broadcast across all lanes.  Two-pass variance.
    inv_cnt = 1.0 / float(n * t * v)

    def lane_group_sum(row_vec):                       # (1, V*Cout) -> (1, V*Cout)
        s = cout
        while s < vc:
            row_vec = row_vec + pltpu.roll(row_vec, s, axis=1)
            s *= 2
        return row_vec

    mean = lane_group_sum(jnp.sum(y2, axis=0, keepdims=True)) * inv_cnt
    centered = y2 - mean
    var = lane_group_sum(jnp.sum(centered * centered, axis=0, keepdims=True)) * inv_cnt
    scale = g_ref[...] * lax.rsqrt(var + BN_EPS)       # rsqrt -> EUP slot
    out_ref[...] = (centered * scale + bb_ref[...]).astype(out_ref.dtype)


def simple_stgcn_block(x_nchw, params, *, vlo=4):
    """x_nchw: (N, C_in, T, V).  params: (ws, bs, wt, bt, gamma, beta) with
    ws: (Ks, C_in, C_out), wt: (Kt, C_out, C_out)."""
    ws, bs, wt, bt, gamma, beta = params
    n, cin, t, v = x_nchw.shape
    ks, _, cout = ws.shape
    kt = wt.shape[0]
    pad_s, pad_t = ks // 2, kt // 2
    vc = v * cout

    # Layout constraints of this kernel (documented per review):
    #   * lane-dense output requires V*C_out to be a multiple of 128,
    #   * the BN roll-add tree requires V to be a power of two,
    #   * V must be divisible by the Vlo factor kept in lanes.
    assert vc % 128 == 0, "V*C_out must be a multiple of 128 (lane-dense layout)"
    assert (v & (v - 1)) == 0 and v % vlo == 0, "V must be a power of two divisible by vlo"

    # ---- glue: lane-dense input (N*T, V*Cin) ----
    x2d = jnp.transpose(x_nchw, (0, 2, 3, 1)).reshape(n * t, v * cin).astype(jnp.float32)

    # ---- static weight-layout prep (outside the kernel) ----
    # Banded spatial weight: W1[vin*Cin+ci, vout*Cout+co] = ws[vin-vout+pad_s, ci, co]
    # when the tap is in range; zero otherwise (absorbs the V zero padding).
    vin = jnp.arange(v)[:, None]
    vout = jnp.arange(v)[None, :]
    tap = vin - vout + pad_s
    valid = (tap >= 0) & (tap < ks)
    w1_4d = jnp.where(valid[:, :, None, None], ws[jnp.clip(tap, 0, ks - 1)], 0.0)
    w1 = jnp.transpose(w1_4d, (0, 2, 1, 3)).reshape(v * cin, vc)

    # Kt-stacked temporal weight, block-diagonal only over the small Vlo factor
    # that stays in lanes: (Kt*Vlo*Cout, Vlo*Cout).  36 KB for these shapes
    # (16x less than the old (Kt, V*C, V*C) expansion).
    w2 = jnp.einsum('ij,kab->kiajb', jnp.eye(vlo, dtype=jnp.float32),
                    wt.astype(jnp.float32)).reshape(kt * vlo * cout, vlo * cout)

    b1 = jnp.tile(bs, v).reshape(1, vc).astype(jnp.float32)
    b2 = jnp.tile(bt, vlo).reshape(1, vlo * cout).astype(jnp.float32)
    g_t = jnp.tile(gamma, v).reshape(1, vc).astype(jnp.float32)
    bb_t = jnp.tile(beta, v).reshape(1, vc).astype(jnp.float32)

    # TODO(synk): for production ST-GCN sizes (C=64, T=300, V=25, large N) this
    # whole-tensor-resident, gridless call must become a pipelined grid over
    # blocks of N*T rows (dimension_semantics=("parallel",...)) with BN split
    # into an accumulate pass (sum/sumsq across an "arbitrary" axis) and a
    # finalize/normalize pass; the compact V-in-M temporal weights used here
    # already keep per-step VMEM small enough for v7x's 64 MiB.
    kernel = functools.partial(stgcn_kernel, n=n, t=t, v=v, cout=cout, vlo=vlo,
                               pad_t=pad_t, kt=kt)
    out2d = pl.pallas_call(
        kernel,
        out_shape=jax.ShapeDtypeStruct((n * t, vc), jnp.float32),
        in_specs=[pl.BlockSpec(memory_space=pltpu.MemorySpace.VMEM)] * 7,
        out_specs=pl.BlockSpec(memory_space=pltpu.MemorySpace.VMEM),
    )(x2d, w1, b1, w2, b2, g_t, bb_t)

    # (N*T, V*Cout) -> (N, Cout, T, V)
    return jnp.transpose(out2d.reshape(n, t, v, cout), (0, 3, 1, 2))


def reference(x_nchw, ws_oihw, bs, wt_oihw, bt, gamma, beta):
    """Pure-JAX reference mirroring the PyTorch forward (training-mode BN)."""
    dn = ('NCHW', 'OIHW', 'NCHW')
    ks = ws_oihw.shape[-1]
    kt = wt_oihw.shape[2]
    y = jax.lax.conv_general_dilated(x_nchw, ws_oihw, (1, 1),
                                     ((0, 0), (ks // 2, ks // 2)),
                                     dimension_numbers=dn)
    y = jax.nn.relu(y + bs[None, :, None, None])
    y = jax.lax.conv_general_dilated(y, wt_oihw, (1, 1),
                                     ((kt // 2, kt // 2), (0, 0)),
                                     dimension_numbers=dn)
    y = jax.nn.relu(y + bt[None, :, None, None])
    mean = jnp.mean(y, axis=(0, 2, 3), keepdims=True)
    var = jnp.mean((y - mean) ** 2, axis=(0, 2, 3), keepdims=True)
    y = (y - mean) / jnp.sqrt(var + BN_EPS)
    return y * gamma[None, :, None, None] + beta[None, :, None, None]


if __name__ == "__main__":
    N, Cin, Cout, T, V = 2, 4, 8, 16, 16
    Ks, Kt = 25, 9   # module defaults

    key = jax.random.PRNGKey(0)
    kx, k1, k2, k3, k4 = jax.random.split(key, 5)

    x = jax.random.normal(kx, (N, Cin, T, V), dtype=jnp.float32)

    # Deterministic synthetic parameters (PyTorch layouts: OIHW conv weights).
    ws_oihw = 0.1 * jax.random.normal(k1, (Cout, Cin, 1, Ks), dtype=jnp.float32)
    bs = 0.1 * jax.random.normal(k2, (Cout,), dtype=jnp.float32)
    wt_oihw = 0.1 * jax.random.normal(k3, (Cout, Cout, Kt, 1), dtype=jnp.float32)
    bt = 0.1 * jax.random.normal(k4, (Cout,), dtype=jnp.float32)
    gamma = jnp.ones((Cout,), jnp.float32)   # BatchNorm2d default weight
    beta = jnp.zeros((Cout,), jnp.float32)   # BatchNorm2d default bias

    # Kernel-layout weights: (K, C_in, C_out).
    ws = jnp.transpose(ws_oihw[:, :, 0, :], (2, 1, 0))
    wt = jnp.transpose(wt_oihw[:, :, :, 0], (2, 1, 0))

    out = simple_stgcn_block(x, (ws, bs, wt, bt, gamma, beta))
    out = jax.block_until_ready(out)

    ref = reference(x, ws_oihw, bs, wt_oihw, bt, gamma, beta)
    np.testing.assert_allclose(np.asarray(out), np.asarray(ref), rtol=2e-4, atol=2e-4)
    print("KERNEL_OK")
</pallas_src>

<mosaic_0001>
module attributes {stable_mosaic.version = 11 : i64} {
  func.func @stgcn_kernel(%arg0: memref<32x64xf32, #tpu.memory_space<vmem>>, %arg1: memref<64x128xf32, #tpu.memory_space<vmem>>, %arg2: memref<1x128xf32, #tpu.memory_space<vmem>>, %arg3: memref<288x32xf32, #tpu.memory_space<vmem>>, %arg4: memref<1x32xf32, #tpu.memory_space<vmem>>, %arg5: memref<1x128xf32, #tpu.memory_space<vmem>>, %arg6: memref<1x128xf32, #tpu.memory_space<vmem>>, %arg7: memref<32x128xf32, #tpu.memory_space<vmem>>) attributes {dimension_semantics = [], scalar_prefetch = 0 : i64, scratch_operands = 0 : i64, tpu.core_type = #tpu.core_type<tc>} {
    %c0 = arith.constant 0 : index
    %c0_0 = arith.constant 0 : index
    %0 = vector.load %arg0[%c0, %c0_0] : memref<32x64xf32, #tpu.memory_space<vmem>>, vector<32x64xf32>
    %c0_1 = arith.constant 0 : index
    %c0_2 = arith.constant 0 : index
    %1 = vector.load %arg1[%c0_1, %c0_2] : memref<64x128xf32, #tpu.memory_space<vmem>>, vector<64x128xf32>
    %cst = arith.constant dense<0.000000e+00> : vector<32x128xf32>
    %2 = tpu.matmul %0, %1, %cst {dimension_numbers = #tpu.dot_dimension_numbers<[1], [0], [0], [1], [0, 0, 1, 1], [], []>} : vector<32x64xf32>, vector<64x128xf32>, vector<32x128xf32> -> vector<32x128xf32>
    %c0_3 = arith.constant 0 : index
    %c0_4 = arith.constant 0 : index
    %3 = vector.load %arg2[%c0_3, %c0_4] : memref<1x128xf32, #tpu.memory_space<vmem>>, vector<1x128xf32>
    %4 = vector.broadcast %3 : vector<1x128xf32> to vector<32x128xf32>
    %5 = arith.addf %2, %4 : vector<32x128xf32>
    %cst_5 = arith.constant 0.000000e+00 : f32
    %6 = vector.broadcast %cst_5 : f32 to vector<32x128xf32>
    %7 = arith.maximumf %5, %6 : vector<32x128xf32>
    %8 = vector.extract_strided_slice %7 {offsets = [0, 0], sizes = [32, 32], strides = [1, 1]} : vector<32x128xf32> to vector<32x32xf32>
    %9 = vector.extract_strided_slice %7 {offsets = [0, 32], sizes = [32, 32], strides = [1, 1]} : vector<32x128xf32> to vector<32x32xf32>
    %10 = vector.extract_strided_slice %7 {offsets = [0, 64], sizes = [32, 32], strides = [1, 1]} : vector<32x128xf32> to vector<32x32xf32>
    %11 = vector.extract_strided_slice %7 {offsets = [0, 96], sizes = [32, 32], strides = [1, 1]} : vector<32x128xf32> to vector<32x32xf32>
    %12 = tpu.concatenate %8, %9, %10, %11 in 0 : vector<32x32xf32>, vector<32x32xf32>, vector<32x32xf32>, vector<32x32xf32> -> vector<128x32xf32>
    %13 = tpu.iota {dimensions = array<i32: 0>} : vector<128x32xi32>
    %c16_i32 = arith.constant 16 : i32
    %c0_i32 = arith.constant 0 : i32
    %14 = arith.cmpi eq, %c16_i32, %c0_i32 : i32
    %c1_i32 = arith.constant 1 : i32
    %15 = arith.select %14, %c1_i32, %c16_i32 : i32
    %16 = vector.broadcast %15 : i32 to vector<128x32xi32>
    %17 = arith.remsi %13, %16 : vector<128x32xi32>
    %c0_i32_6 = arith.constant 0 : i32
    %18 = vector.broadcast %c0_i32_6 : i32 to vector<128x32xi32>
    %19 = arith.cmpi ne, %17, %18 : vector<128x32xi32>
    %c0_i32_7 = arith.constant 0 : i32
    %20 = vector.broadcast %c0_i32_7 : i32 to vector<128x32xi32>
    %21 = arith.cmpi slt, %17, %20 : vector<128x32xi32>
    %c0_i32_8 = arith.constant 0 : i32
    %22 = arith.cmpi slt, %15, %c0_i32_8 : i32
    %23 = vector.broadcast %22 : i1 to vector<128x32xi1>
    %24 = vector.broadcast %23 : vector<128x32xi1> to vector<128x32xi1>
    %25 = arith.xori %21, %24 : vector<128x32xi1>
    %26 = arith.andi %25, %19 : vector<128x32xi1>
    %27 = vector.broadcast %15 : i32 to vector<128x32xi32>
    %28 = arith.addi %17, %27 : vector<128x32xi32>
    %29 = arith.select %26, %28, %17 : vector<128x32xi1>, vector<128x32xi32>
    %30 = vector.extract_strided_slice %12 {offsets = [124, 0], sizes = [4, 32], strides = [1, 1]} : vector<128x32xf32> to vector<4x32xf32>
    %31 = vector.extract_strided_slice %12 {offsets = [0, 0], sizes = [124, 32], strides = [1, 1]} : vector<128x32xf32> to vector<124x32xf32>
    %32 = tpu.concatenate %30, %31 in 0 : vector<4x32xf32>, vector<124x32xf32> -> vector<128x32xf32>
    %c-4_i32 = arith.constant -4 : i32
    %33 = vector.broadcast %c-4_i32 : i32 to vector<128x32xi32>
    %34 = arith.addi %29, %33 : vector<128x32xi32>
    %c0_i32_9 = arith.constant 0 : i32
    %35 = vector.broadcast %c0_i32_9 : i32 to vector<128x32xi32>
    %36 = arith.cmpi sge, %34, %35 : vector<128x32xi32>
    %c-4_i32_10 = arith.constant -4 : i32
    %37 = vector.broadcast %c-4_i32_10 : i32 to vector<128x32xi32>
    %38 = arith.addi %29, %37 : vector<128x32xi32>
    %c16_i32_11 = arith.constant 16 : i32
    %39 = vector.broadcast %c16_i32_11 : i32 to vector<128x32xi32>
    %40 = arith.cmpi slt, %38, %39 : vector<128x32xi32>
    %41 = arith.andi %36, %40 : vector<128x32xi1>
    %cst_12 = arith.constant 0.000000e+00 : f32
    %42 = vector.broadcast %cst_12 : f32 to vector<128x32xf32>
    %43 = arith.select %41, %32, %42 : vector<128x32xi1>, vector<128x32xf32>
    %44 = vector.extract_strided_slice %12 {offsets = [125, 0], sizes = [3, 32], strides = [1, 1]} : vector<128x32xf32> to vector<3x32xf32>
    %45 = vector.extract_strided_slice %12 {offsets = [0, 0], sizes = [125, 32], strides = [1, 1]} : vector<128x32xf32> to vector<125x32xf32>
    %46 = tpu.concatenate %44, %45 in 0 : vector<3x32xf32>, vector<125x32xf32> -> vector<128x32xf32>
    %c-3_i32 = arith.constant -3 : i32
    %47 = vector.broadcast %c-3_i32 : i32 to vector<128x32xi32>
    %48 = arith.addi %29, %47 : vector<128x32xi32>
    %c0_i32_13 = arith.constant 0 : i32
    %49 = vector.broadcast %c0_i32_13 : i32 to vector<128x32xi32>
    %50 = arith.cmpi sge, %48, %49 : vector<128x32xi32>
    %c-3_i32_14 = arith.constant -3 : i32
    %51 = vector.broadcast %c-3_i32_14 : i32 to vector<128x32xi32>
    %52 = arith.addi %29, %51 : vector<128x32xi32>
    %c16_i32_15 = arith.constant 16 : i32
    %53 = vector.broadcast %c16_i32_15 : i32 to vector<128x32xi32>
    %54 = arith.cmpi slt, %52, %53 : vector<128x32xi32>
    %55 = arith.andi %50, %54 : vector<128x32xi1>
    %cst_16 = arith.constant 0.000000e+00 : f32
    %56 = vector.broadcast %cst_16 : f32 to vector<128x32xf32>
    %57 = arith.select %55, %46, %56 : vector<128x32xi1>, vector<128x32xf32>
    %58 = vector.extract_strided_slice %12 {offsets = [126, 0], sizes = [2, 32], strides = [1, 1]} : vector<128x32xf32> to vector<2x32xf32>
    %59 = vector.extract_strided_slice %12 {offsets = [0, 0], sizes = [126, 32], strides = [1, 1]} : vector<128x32xf32> to vector<126x32xf32>
    %60 = tpu.concatenate %58, %59 in 0 : vector<2x32xf32>, vector<126x32xf32> -> vector<128x32xf32>
    %c-2_i32 = arith.constant -2 : i32
    %61 = vector.broadcast %c-2_i32 : i32 to vector<128x32xi32>
    %62 = arith.addi %29, %61 : vector<128x32xi32>
    %c0_i32_17 = arith.constant 0 : i32
    %63 = vector.broadcast %c0_i32_17 : i32 to vector<128x32xi32>
    %64 = arith.cmpi sge, %62, %63 : vector<128x32xi32>
    %c-2_i32_18 = arith.constant -2 : i32
    %65 = vector.broadcast %c-2_i32_18 : i32 to vector<128x32xi32>
    %66 = arith.addi %29, %65 : vector<128x32xi32>
    %c16_i32_19 = arith.constant 16 : i32
    %67 = vector.broadcast %c16_i32_19 : i32 to vector<128x32xi32>
    %68 = arith.cmpi slt, %66, %67 : vector<128x32xi32>
    %69 = arith.andi %64, %68 : vector<128x32xi1>
    %cst_20 = arith.constant 0.000000e+00 : f32
    %70 = vector.broadcast %cst_20 : f32 to vector<128x32xf32>
    %71 = arith.select %69, %60, %70 : vector<128x32xi1>, vector<128x32xf32>
    %72 = vector.extract_strided_slice %12 {offsets = [127, 0], sizes = [1, 32], strides = [1, 1]} : vector<128x32xf32> to vector<1x32xf32>
    %73 = vector.extract_strided_slice %12 {offsets = [0, 0], sizes = [127, 32], strides = [1, 1]} : vector<128x32xf32> to vector<127x32xf32>
    %74 = tpu.concatenate %72, %73 in 0 : vector<1x32xf32>, vector<127x32xf32> -> vector<128x32xf32>
    %c-1_i32 = arith.constant -1 : i32
    %75 = vector.broadcast %c-1_i32 : i32 to vector<128x32xi32>
    %76 = arith.addi %29, %75 : vector<128x32xi32>
    %c0_i32_21 = arith.constant 0 : i32
    %77 = vector.broadcast %c0_i32_21 : i32 to vector<128x32xi32>
    %78 = arith.cmpi sge, %76, %77 : vector<128x32xi32>
    %c-1_i32_22 = arith.constant -1 : i32
    %79 = vector.broadcast %c-1_i32_22 : i32 to vector<128x32xi32>
    %80 = arith.addi %29, %79 : vector<128x32xi32>
    %c16_i32_23 = arith.constant 16 : i32
    %81 = vector.broadcast %c16_i32_23 : i32 to vector<128x32xi32>
    %82 = arith.cmpi slt, %80, %81 : vector<128x32xi32>
    %83 = arith.andi %78, %82 : vector<128x32xi1>
    %cst_24 = arith.constant 0.000000e+00 : f32
    %84 = vector.broadcast %cst_24 : f32 to vector<128x32xf32>
    %85 = arith.select %83, %74, %84 : vector<128x32xi1>, vector<128x32xf32>
    %86 = vector.extract_strided_slice %12 {offsets = [1, 0], sizes = [127, 32], strides = [1, 1]} : vector<128x32xf32> to vector<127x32xf32>
    %87 = vector.extract_strided_slice %12 {offsets = [0, 0], sizes = [1, 32], strides = [1, 1]} : vector<128x32xf32> to vector<1x32xf32>
    %88 = tpu.concatenate %86, %87 in 0 : vector<127x32xf32>, vector<1x32xf32> -> vector<128x32xf32>
    %c1_i32_25 = arith.constant 1 : i32
    %89 = vector.broadcast %c1_i32_25 : i32 to vector<128x32xi32>
    %90 = arith.addi %29, %89 : vector<128x32xi32>
    %c0_i32_26 = arith.constant 0 : i32
    %91 = vector.broadcast %c0_i32_26 : i32 to vector<128x32xi32>
    %92 = arith.cmpi sge, %90, %91 : vector<128x32xi32>
    %c1_i32_27 = arith.constant 1 : i32
    %93 = vector.broadcast %c1_i32_27 : i32 to vector<128x32xi32>
    %94 = arith.addi %29, %93 : vector<128x32xi32>
    %c16_i32_28 = arith.constant 16 : i32
    %95 = vector.broadcast %c16_i32_28 : i32 to vector<128x32xi32>
    %96 = arith.cmpi slt, %94, %95 : vector<128x32xi32>
    %97 = arith.andi %92, %96 : vector<128x32xi1>
    %cst_29 = arith.constant 0.000000e+00 : f32
    %98 = vector.broadcast %cst_29 : f32 to vector<128x32xf32>
    %99 = arith.select %97, %88, %98 : vector<128x32xi1>, vector<128x32xf32>
    %100 = vector.extract_strided_slice %12 {offsets = [2, 0], sizes = [126, 32], strides = [1, 1]} : vector<128x32xf32> to vector<126x32xf32>
    %101 = vector.extract_strided_slice %12 {offsets = [0, 0], sizes = [2, 32], strides = [1, 1]} : vector<128x32xf32> to vector<2x32xf32>
    %102 = tpu.concatenate %100, %101 in 0 : vector<126x32xf32>, vector<2x32xf32> -> vector<128x32xf32>
    %c2_i32 = arith.constant 2 : i32
    %103 = vector.broadcast %c2_i32 : i32 to vector<128x32xi32>
    %104 = arith.addi %29, %103 : vector<128x32xi32>
    %c0_i32_30 = arith.constant 0 : i32
    %105 = vector.broadcast %c0_i32_30 : i32 to vector<128x32xi32>
    %106 = arith.cmpi sge, %104, %105 : vector<128x32xi32>
    %c2_i32_31 = arith.constant 2 : i32
    %107 = vector.broadcast %c2_i32_31 : i32 to vector<128x32xi32>
    %108 = arith.addi %29, %107 : vector<128x32xi32>
    %c16_i32_32 = arith.constant 16 : i32
    %109 = vector.broadcast %c16_i32_32 : i32 to vector<128x32xi32>
    %110 = arith.cmpi slt, %108, %109 : vector<128x32xi32>
    %111 = arith.andi %106, %110 : vector<128x32xi1>
    %cst_33 = arith.constant 0.000000e+00 : f32
    %112 = vector.broadcast %cst_33 : f32 to vector<128x32xf32>
    %113 = arith.select %111, %102, %112 : vector<128x32xi1>, vector<128x32xf32>
    %114 = vector.extract_strided_slice %12 {offsets = [3, 0], sizes = [125, 32], strides = [1, 1]} : vector<128x32xf32> to vector<125x32xf32>
    %115 = vector.extract_strided_slice %12 {offsets = [0, 0], sizes = [3, 32], strides = [1, 1]} : vector<128x32xf32> to vector<3x32xf32>
    %116 = tpu.concatenate %114, %115 in 0 : vector<125x32xf32>, vector<3x32xf32> -> vector<128x32xf32>
    %c3_i32 = arith.constant 3 : i32
    %117 = vector.broadcast %c3_i32 : i32 to vector<128x32xi32>
    %118 = arith.addi %29, %117 : vector<128x32xi32>
    %c0_i32_34 = arith.constant 0 : i32
    %119 = vector.broadcast %c0_i32_34 : i32 to vector<128x32xi32>
    %120 = arith.cmpi sge, %118, %119 : vector<128x32xi32>
    %c3_i32_35 = arith.constant 3 : i32
    %121 = vector.broadcast %c3_i32_35 : i32 to vector<128x32xi32>
    %122 = arith.addi %29, %121 : vector<128x32xi32>
    %c16_i32_36 = arith.constant 16 : i32
    %123 = vector.broadcast %c16_i32_36 : i32 to vector<128x32xi32>
    %124 = arith.cmpi slt, %122, %123 : vector<128x32xi32>
    %125 = arith.andi %120, %124 : vector<128x32xi1>
    %cst_37 = arith.constant 0.000000e+00 : f32
    %126 = vector.broadcast %cst_37 : f32 to vector<128x32xf32>
    %127 = arith.select %125, %116, %126 : vector<128x32xi1>, vector<128x32xf32>
    %128 = vector.extract_strided_slice %12 {offsets = [4, 0], sizes = [124, 32], strides = [1, 1]} : vector<128x32xf32> to vector<124x32xf32>
    %129 = vector.extract_strided_slice %12 {offsets = [0, 0], sizes = [4, 32], strides = [1, 1]} : vector<128x32xf32> to vector<4x32xf32>
    %130 = tpu.concatenate %128, %129 in 0 : vector<124x32xf32>, vector<4x32xf32> -> vector<128x32xf32>
    %c4_i32 = arith.constant 4 : i32
    %131 = vector.broadcast %c4_i32 : i32 to vector<128x32xi32>
    %132 = arith.addi %29, %131 : vector<128x32xi32>
    %c0_i32_38 = arith.constant 0 : i32
    %133 = vector.broadcast %c0_i32_38 : i32 to vector<128x32xi32>
    %134 = arith.cmpi sge, %132, %133 : vector<128x32xi32>
    %c4_i32_39 = arith.constant 4 : i32
    %135 = vector.broadcast %c4_i32_39 : i32 to vector<128x32xi32>
    %136 = arith.addi %29, %135 : vector<128x32xi32>
    %c16_i32_40 = arith.constant 16 : i32
    %137 = vector.broadcast %c16_i32_40 : i32 to vector<128x32xi32>
    %138 = arith.cmpi slt, %136, %137 : vector<128x32xi32>
    %139 = arith.andi %134, %138 : vector<128x32xi1>
    %cst_41 = arith.constant 0.000000e+00 : f32
    %140 = vector.broadcast %cst_41 : f32 to vector<128x32xf32>
    %141 = arith.select %139, %130, %140 : vector<128x32xi1>, vector<128x32xf32>
    %142 = tpu.concatenate %43, %57, %71, %85, %12, %99, %113, %127, %141 in 1 : vector<128x32xf32>, vector<128x32xf32>, vector<128x32xf32>, vector<128x32xf32>, vector<128x32xf32>, vector<128x32xf32>, vector<128x32xf32>, vector<128x32xf32>, vector<128x32xf32> -> vector<128x288xf32>
    %c0_42 = arith.constant 0 : index
    %c0_43 = arith.constant 0 : index
    %143 = vector.load %arg3[%c0_42, %c0_43] : memref<288x32xf32, #tpu.memory_space<vmem>>, vector<288x32xf32>
    %cst_44 = arith.constant dense<0.000000e+00> : vector<128x32xf32>
    %144 = tpu.matmul %142, %143, %cst_44 {dimension_numbers = #tpu.dot_dimension_numbers<[1], [0], [0], [1], [0, 0, 1, 1], [], []>} : vector<128x288xf32>, vector<288x32xf32>, vector<128x32xf32> -> vector<128x32xf32>
    %c0_45 = arith.constant 0 : index
    %c0_46 = arith.constant 0 : index
    %145 = vector.load %arg4[%c0_45, %c0_46] : memref<1x32xf32, #tpu.memory_space<vmem>>, vector<1x32xf32>
    %146 = vector.broadcast %145 : vector<1x32xf32> to vector<128x32xf32>
    %147 = arith.addf %144, %146 : vector<128x32xf32>
    %cst_47 = arith.constant 0.000000e+00 : f32
    %148 = vector.broadcast %cst_47 : f32 to vector<128x32xf32>
    %149 = arith.maximumf %147, %148 : vector<128x32xf32>
    %150 = vector.extract_strided_slice %149 {offsets = [0, 0], sizes = [32, 32], strides = [1, 1]} : vector<128x32xf32> to vector<32x32xf32>
    %151 = vector.extract_strided_slice %149 {offsets = [32, 0], sizes = [32, 32], strides = [1, 1]} : vector<128x32xf32> to vector<32x32xf32>
    %152 = vector.extract_strided_slice %149 {offsets = [64, 0], sizes = [32, 32], strides = [1, 1]} : vector<128x32xf32> to vector<32x32xf32>
    %153 = vector.extract_strided_slice %149 {offsets = [96, 0], sizes = [32, 32], strides = [1, 1]} : vector<128x32xf32> to vector<32x32xf32>
    %154 = tpu.concatenate %150, %151, %152, %153 in 1 : vector<32x32xf32>, vector<32x32xf32>, vector<32x32xf32>, vector<32x32xf32> -> vector<32x128xf32>
    %cst_48 = arith.constant dense<0.000000e+00> : vector<128xf32>
    %155 = vector.multi_reduction <add>, %154, %cst_48 [0] : vector<32x128xf32> to vector<128xf32>
    %156 = vector.shape_cast %155 : vector<128xf32> to vector<1x128xf32>
    %c8_i32 = arith.constant 8 : i32
    %157 = tpu.dynamic_rotate %156 by %c8_i32 dim 1 : vector<1x128xf32>, i32 -> vector<1x128xf32>
    %158 = arith.addf %156, %157 : vector<1x128xf32>
    %c16_i32_49 = arith.constant 16 : i32
    %159 = tpu.dynamic_rotate %158 by %c16_i32_49 dim 1 : vector<1x128xf32>, i32 -> vector<1x128xf32>
    %160 = arith.addf %158, %159 : vector<1x128xf32>
    %c32_i32 = arith.constant 32 : i32
    %161 = tpu.dynamic_rotate %160 by %c32_i32 dim 1 : vector<1x128xf32>, i32 -> vector<1x128xf32>
    %162 = arith.addf %160, %161 : vector<1x128xf32>
    %c64_i32 = arith.constant 64 : i32
    %163 = tpu.dynamic_rotate %162 by %c64_i32 dim 1 : vector<1x128xf32>, i32 -> vector<1x128xf32>
    %164 = arith.addf %162, %163 : vector<1x128xf32>
    %cst_50 = arith.constant 0.001953125 : f32
    %165 = vector.broadcast %cst_50 : f32 to vector<1x128xf32>
    %166 = arith.mulf %164, %165 : vector<1x128xf32>
    %167 = vector.broadcast %166 : vector<1x128xf32> to vector<32x128xf32>
    %168 = arith.subf %154, %167 : vector<32x128xf32>
    %169 = arith.mulf %168, %168 : vector<32x128xf32>
    %cst_51 = arith.constant dense<0.000000e+00> : vector<128xf32>
    %170 = vector.multi_reduction <add>, %169, %cst_51 [0] : vector<32x128xf32> to vector<128xf32>
    %171 = vector.shape_cast %170 : vector<128xf32> to vector<1x128xf32>
    %c8_i32_52 = arith.constant 8 : i32
    %172 = tpu.dynamic_rotate %171 by %c8_i32_52 dim 1 : vector<1x128xf32>, i32 -> vector<1x128xf32>
    %173 = arith.addf %171, %172 : vector<1x128xf32>
    %c16_i32_53 = arith.constant 16 : i32
    %174 = tpu.dynamic_rotate %173 by %c16_i32_53 dim 1 : vector<1x128xf32>, i32 -> vector<1x128xf32>
    %175 = arith.addf %173, %174 : vector<1x128xf32>
    %c32_i32_54 = arith.constant 32 : i32
    %176 = tpu.dynamic_rotate %175 by %c32_i32_54 dim 1 : vector<1x128xf32>, i32 -> vector<1x128xf32>
    %177 = arith.addf %175, %176 : vector<1x128xf32>
    %c64_i32_55 = arith.constant 64 : i32
    %178 = tpu.dynamic_rotate %177 by %c64_i32_55 dim 1 : vector<1x128xf32>, i32 -> vector<1x128xf32>
    %179 = arith.addf %177, %178 : vector<1x128xf32>
    %cst_56 = arith.constant 0.001953125 : f32
    %180 = vector.broadcast %cst_56 : f32 to vector<1x128xf32>
    %181 = arith.mulf %179, %180 : vector<1x128xf32>
    %c0_57 = arith.constant 0 : index
    %c0_58 = arith.constant 0 : index
    %182 = vector.load %arg5[%c0_57, %c0_58] : memref<1x128xf32, #tpu.memory_space<vmem>>, vector<1x128xf32>
    %cst_59 = arith.constant 9.99999974E-6 : f32
    %183 = vector.broadcast %cst_59 : f32 to vector<1x128xf32>
    %184 = arith.addf %181, %183 : vector<1x128xf32>
    %185 = math.rsqrt %184 : vector<1x128xf32>
    %186 = arith.mulf %182, %185 : vector<1x128xf32>
    %187 = vector.broadcast %186 : vector<1x128xf32> to vector<32x128xf32>
    %188 = arith.mulf %168, %187 : vector<32x128xf32>
    %c0_60 = arith.constant 0 : index
    %c0_61 = arith.constant 0 : index
    %189 = vector.load %arg6[%c0_60, %c0_61] : memref<1x128xf32, #tpu.memory_space<vmem>>, vector<1x128xf32>
    %190 = vector.broadcast %189 : vector<1x128xf32> to vector<32x128xf32>
    %191 = arith.addf %188, %190 : vector<32x128xf32>
    %c0_62 = arith.constant 0 : index
    %c0_63 = arith.constant 0 : index
    %192 = vector.load %arg7[%c0_62, %c0_63] : memref<32x128xf32, #tpu.memory_space<vmem>>, vector<32x128xf32>
    tpu.vector_store %arg7[%c0_62, %c0_63], %191 {strides = array<i32>} : memref<32x128xf32, #tpu.memory_space<vmem>>, vector<32x128xf32>,
    return
  }
}

</mosaic_0001>

<bundles_post_ra>
// kernel: tpu_custom_call.1
= control target key start
LH: loop header
LB: loop body
LE: loop exit
PB: predicated region body
PF: predicated region fallthrough
CT: control target
= control target key end

     0   :  { %vm46_vm0 = vcmask 523264   ;;  %s4391_s0 = inlined_call_operand.vmem [shape: f32[32,64], index: 0, kind: input, shape index: {}]   ;;  %s4392_s1 = inlined_call_operand.vmem [shape: f32[64,128], index: 1, kind: input, shape index: {}]   ;;  %s4393_s2 = inlined_call_operand.vmem [shape: f32[1,128], index: 2, kind: input, shape index: {}]   ;;  %s4394_s3 = inlined_call_operand.vmem [shape: f32[288,32], index: 3, kind: input, shape index: {}]   ;;  %s4395_s4 = inlined_call_operand.vmem [shape: f32[1,32], index: 4, kind: input, shape index: {}]   ;;  %s4396_s5 = inlined_call_operand.vmem [shape: f32[1,128], index: 5, kind: input, shape index: {}]   ;;  %s4397_s6 = inlined_call_operand.vmem [shape: f32[1,128], index: 6, kind: input, shape index: {}]   ;;  %s4398_s7 = inlined_call_operand.hbm [shape: f32[32,128], index: 7, kind: output, shape index: {}]  }
   0x1   :  { %v31_v0 = vld [vmem:[%s4392_s1] sm:$0xff]  ;;  %v32_v1 = vld [vmem:[%s4392_s1 + $0x8] sm:$0xff]  ;;  %v33_v2 = vld [vmem:[%s4392_s1 + $0x10] sm:$0xff] }
   0x2   :  { %v2616_v3 = vpack.c.bf16 %v32_v1, %v31_v0  ;;  %v34_v4 = vld [vmem:[%s4392_s1 + $0x18] sm:$0xff]  ;;  %v35_v6 = vld [vmem:[%s4392_s1 + $0x20] sm:$0xff]  ;;  %v36_v7 = vld [vmem:[%s4392_s1 + $0x28] sm:$0xff] }
   0x3   :  { %v2620_v5 = vpack.c.bf16 %v34_v4, %v33_v2  ;;  %v27_v8 = vld [vmem:[%s4391_s0] sm:$0xff] }
   0x4   :  { %2617 = vmatprep.subr.bf16.mxu0 %v2616_v3  ;;  %2578 = vmatprep.mubr.msk.f32.mxu0 %vm46_vm0, %v27_v8 }
   0x5   :  { %2619 = vmatpush3.bf16.msra.mxu0 %v2616_v3 }
   0x6   :  { %12 = vsyncpa [#allocation3], 0  ;;  %2621 = vmatprep.subr.bf16.mxu0 %v2620_v5  ;;  %v2624_v9 = vpack.c.bf16 %v36_v7, %v35_v6  ;;  %v37_v10 = vld [vmem:[%s4392_s1 + $0x30] sm:$0xff]  ;;  %v38_v11 = vld [vmem:[%s4392_s1 + $0x38] sm:$0xff]  ;;  %v188_v29 = vlaneseq  ;;  %s2961_s28 = smov 96   ;;  %s2962_s9 = smov 64  }
   0x7   :  { %v2628_v12 = vpack.c.bf16 %v38_v11, %v37_v10  ;;  %v28_v13 = vld [vmem:[%s4391_s0 + $0x8] sm:$0xff]  ;;  %v29_v14 = vld [vmem:[%s4391_s0 + $0x10] sm:$0xff]  ;;  %v30_v15 = vld [vmem:[%s4391_s0 + $0x18] sm:$0xff]  ;;  %s2963_s10 = smov 32   ;;  %vm529_vm1 = vcmask 1042432   ;;  %vm4413_vm2 = vcmask 1046528  }
   0x8   :  { %v1885_v16 = vld [vmem:[%s4394_s3 + $0x80] sm:$0xff]  ;;  %v1886_v17 = vld [vmem:[%s4394_s3 + $0x88] sm:$0xff]  ;;  %v1887_v22 = vld [vmem:[%s4394_s3 + $0x90] sm:$0xff]  ;;  %v3089_v41 = vshrl.u32 %v188_v29, 7  ;;  %vm659_vm3 = vcmask 1041408   ;;  %vm1047_vm4 = vcmask 1045504  }
   0x9   :  { %2623 = vmatpush3.bf16.msra.mxu0 %v2620_v5  ;;  %v2632_v18 = vpack.c.bf16 %v1886_v17, %v1885_v16  ;;  %v1869_v19 = vld [vmem:[%s4394_s3] sm:$0xff]  ;;  %v1870_v20 = vld [vmem:[%s4394_s3 + $0x8] sm:$0xff]  ;;  %v1888_v23 = vld [vmem:[%s4394_s3 + $0x98] sm:$0xff]  ;;  %vm789_vm7 = vcmask 1040384   ;;  %vm4410_vm9 = vcmask 1043456   ;;  %vm1177_vm11 = vcmask 1044480  }
   0xa   :  { %2625 = vmatprep.subr.bf16.mxu0 %v2624_v9  ;;  %v2634_v21 = vpack.c.bf16 %v1870_v20, %v1869_v19  ;;  %v2636_v24 = vpack.c.bf16 %v1888_v23, %v1887_v22  ;;  %v1871_v25 = vld [vmem:[%s4394_s3 + $0x10] sm:$0xff]  ;;  %v1872_v26 = vld [vmem:[%s4394_s3 + $0x18] sm:$0xff]  ;;  %v2427_v28 = vld [vmem:[%s4393_s2] ss:$0 sm:$0xff]  ;;  %v191_v50 = vadd.s32 16, %v3089_v41  ;;  %v190_v57 = vadd.s32 8, %v3089_v41 }
   0xb   :  { %2672 = vmatprep.subr.bf16.mxu1 %v2632_v18  ;;  %v2638_v27 = vpack.c.bf16 %v1872_v26, %v1871_v25  ;;  %v1889_v30 = vld [vmem:[%s4394_s3 + $0xa0] sm:$0xff]  ;;  %v1890_v31 = vld [vmem:[%s4394_s3 + $0xa8] sm:$0xff]  ;;  %v1891_v42 = vld [vmem:[%s4394_s3 + $0xb0] sm:$0xff] }
   0xc   :  { %2680 = vmatpush3.bf16.msra.mxu1 %v2634_v21  ;;  %v2640_v33 = vpack.c.bf16 %v1890_v31, %v1889_v30  ;;  %v1873_v34 = vld [vmem:[%s4394_s3 + $0x20] sm:$0xff]  ;;  %v1874_v35 = vld [vmem:[%s4394_s3 + $0x28] sm:$0xff]  ;;  %v1892_v43 = vld [vmem:[%s4394_s3 + $0xb8] sm:$0xff]  ;;  %v3114_v54 = vand.u32 15, %v191_v50  ;;  %v3149_v4 = vand.u32 15, %v190_v57 }
   0xd   :  { %2627 = vmatpush3.bf16.msra.mxu0 %v2624_v9  ;;  %2673 = vmatprep.subr.bf16.mxu1 %v2636_v24  ;;  %v2642_v38 = vpack.c.bf16 %v1874_v35, %v1873_v34  ;;  %v2644_v46 = vpack.c.bf16 %v1892_v43, %v1891_v42  ;;  %v1875_v48 = vld [vmem:[%s4394_s3 + $0x30] sm:$0xff]  ;;  %v1876_v49 = vld [vmem:[%s4394_s3 + $0x38] sm:$0xff]  ;;  %v1893_v58 = vld [vmem:[%s4394_s3 + $0xc0] sm:$0xff] }
   0xe   :  { %2629 = vmatprep.subr.bf16.mxu0 %v2628_v12  ;;  %v2646_v52 = vpack.c.bf16 %v1876_v49, %v1875_v48  ;;  %v1894_v59 = vld [vmem:[%s4394_s3 + $0xc8] sm:$0xff]  ;;  %v1877_v60 = vld [vmem:[%s4394_s3 + $0x40] sm:$0xff]  ;;  %v579_v61 = vadd.s32 4294967293, %v3114_v54  ;;  %v709_v62 = vadd.s32 4294967294, %v3114_v54  ;;  %v1895_v0 = vld [vmem:[%s4394_s3 + $0xd0] sm:$0xff]  ;;  %v3154_v5 = vadd.s32 4294967295, %v3114_v54 }
   0xf   :  { %v1878_v63 = vld [vmem:[%s4394_s3 + $0x48] sm:$0xff]  ;;  %v1896_v1 = vld [vmem:[%s4394_s3 + $0xd8] sm:$0xff]  ;;  %v2648_v6 = vpack.c.bf16 %v1894_v59, %v1893_v58  ;;  %v1879_v9 = vld [vmem:[%s4394_s3 + $0x50] sm:$0xff]  ;;  %v968_v23 = vadd.s32 1, %v3149_v4 }
  0x10   :  { %2681 = vmatpush3.bf16.msra.mxu1 %v2638_v27  ;;  %v2650_v7 = vpack.c.bf16 %v1878_v63, %v1877_v60  ;;  %v2652_v8 = vpack.c.bf16 %v1896_v1, %v1895_v0  ;;  %v1880_v10 = vld [vmem:[%s4394_s3 + $0x58] sm:$0xff]  ;;  %vm595_vm5 = vcmp.ge.s32.totalorder %v579_v61, 0  ;;  %vm725_vm6 = vcmp.ge.s32.totalorder %v709_v62, 0  ;;  %v1881_v25 = vld [vmem:[%s4394_s3 + $0x60] sm:$0xff]  ;;  %v1882_v26 = vld [vmem:[%s4394_s3 + $0x68] sm:$0xff] }
  0x11   :  { %2631 = vmatpush3.bf16.msra.mxu0 %v2628_v12  ;;  %2674 = vmatprep.subr.bf16.mxu1 %v2640_v33  ;;  %v2654_v22 = vpack.c.bf16 %v1880_v10, %v1879_v9  ;;  %vm855_vm8 = vcmp.ge.s32.totalorder %v3154_v5, 0  ;;  %v1899_v31 = vld [vmem:[%s4394_s3 + $0xf0] sm:$0xff]  ;;  %vm1000_vm12 = vcmp.lt.s32.totalorder %v968_v23, 16  ;;  %v1228_v1 = vadd.s32 3, %v3149_v4 }
  0x12   :  { %2633 = vmatprep.subr.bf16.mxu0 %v2632_v18  ;;  %v196_v23 = vadd.s32 56, %v3089_v41 }
  0x13   :  { %vm1260_vm14 = vcmp.lt.s32.totalorder %v1228_v1, 16 }
  0x14   :  { %2579 = vmatmul.mubr.msk.f32.vlgmr.msra.gmra.mrb[0].mxu0 %vm46_vm0, %v28_v13  ;;  %2682 = vmatpush3.bf16.msra.mxu1 %v2642_v38  ;;  %v1897_v13 = vld [vmem:[%s4394_s3 + $0xe0] sm:$0xff] }
  0x15   :  { %2581 = vmatprep.mubr.msk.f32.mxu0 %vm46_vm0, %v29_v14  ;;  %2635 = vmatpush3.bf16.msra.mxu0 %v2634_v21  ;;  %v1898_v14 = vld [vmem:[%s4394_s3 + $0xe8] sm:$0xff] }
  0x16   :  { %2637 = vmatprep.subr.bf16.mxu0 %v2636_v24  ;;  %2675 = vmatprep.subr.bf16.mxu1 %v2644_v46  ;;  %v2656_v24 = vpack.c.bf16 %v1898_v14, %v1897_v13 }
  0x18   :  { %2582 = vmatmul.mubr.msk.f32.gmra.mrb[2].mxu0 %vm46_vm0, %v30_v15  ;;  %2683 = vmatpush3.bf16.msra.mxu1 %v2646_v52 }
  0x19   :  { %2639 = vmatpush3.bf16.msra.mxu0 %v2638_v27  ;;  %2676 = vmatprep.subr.bf16.mxu1 %v2648_v6  ;;  %v1308_v27 = vadd.s32 4, %v3149_v4 }
  0x1a   :  { %2641 = vmatprep.subr.bf16.mxu0 %v2640_v33 }
  0x1b   :  { %vm1340_vm10 = vcmp.lt.s32.totalorder %v1308_v27, 16 }
  0x1c   :  { %2684 = vmatpush3.bf16.msra.mxu1 %v2650_v7 }
  0x1d   :  { %2643 = vmatpush3.bf16.msra.mxu0 %v2642_v38  ;;  %2677 = vmatprep.subr.bf16.mxu1 %v2652_v8  ;;  %v2658_v38 = vpack.c.bf16 %v1882_v26, %v1881_v25  ;;  %v449_v25 = vadd.s32 4294967292, %v3114_v54  ;;  %v3312_v54 = vand.u32 15, %v3089_v41 }
  0x1e   :  { %2645 = vmatprep.subr.bf16.mxu0 %v2644_v46  ;;  %v1884_v46 = vld [vmem:[%s4394_s3 + $0x78] sm:$0xff] }
  0x20   :  { %2685 = vmatpush3.bf16.msra.mxu1 %v2654_v22 }
  0x21   :  { %2647 = vmatpush3.bf16.msra.mxu0 %v2646_v52  ;;  %2678 = vmatprep.subr.bf16.mxu1 %v2656_v24 }
  0x22   :  { %2649 = vmatprep.subr.bf16.mxu0 %v2648_v6 }
  0x24   :  { %2686 = vmatpush3.bf16.msra.mxu1 %v2658_v38 }
  0x25   :  { %2651 = vmatpush3.bf16.msra.mxu0 %v2650_v7 }
  0x26   :  { %2653 = vmatprep.subr.bf16.mxu0 %v2652_v8 }
  0x29   :  { %2655 = vmatpush3.bf16.msra.mxu0 %v2654_v22 }
  0x2a   :  { %2657 = vmatprep.subr.bf16.mxu0 %v2656_v24 }
  0x2d   :  { %2659 = vmatpush3.bf16.msra.mxu0 %v2658_v38 }
  0xe7   :  { %v2580_v32 = vpop.f32.mrb[0].mxu0 }
  0xe8   :  { %v131_v36 = vadd.f32 %v2580_v32, %v2427_v28  ;;  %v125_v37 = vpop.f32.mrb[1].mxu0  ;;  %v1900_v32 = vld [vmem:[%s4394_s3 + $0xf8] sm:$0xff] }
  0xe9   :  { %v126_v39 = vadd.f32 %v2427_v28, %v125_v37  ;;  %v2660_v43 = vpack.c.bf16 %v1900_v32, %v1899_v31 }
  0xea   :  { %v3087_v40 = vmax.f32 %v131_v36, 0.0 }
  0xeb   :  { %v3097_v44 = vmax.f32 %v126_v39, 0.0  ;;  %v2583_v45 = vpop.f32.mrb[2].mxu0  ;;  %2679 = vmatprep.subr.bf16.mxu1 %v2660_v43  ;;  %2661 = vmatprep.subr.bf16.mxu0 %v2660_v43 }
  0xec   :  { %154 = vrot.lane.b32.xlu0 %v3087_v40, %s2961_s28  ;;  %v135_v47 = vpop.f32.mrb[3].mxu0  ;;  %v141_v51 = vadd.f32 %v2583_v45, %v2427_v28  ;;  %v531_v11 = vrot.slane %v3087_v40, 5  ;;  %v661_v12 = vrot.slane %v3087_v40, 6  ;;  %v4399_v39 = vrot.slane %v3087_v40, 4  ;;  %v1883_v45 = vld [vmem:[%s4394_s3 + $0x70] sm:$0xff] }
  0xed   :  { %164 = vrot.lane.b32.xlu1 %v3097_v44, %s2962_s9  ;;  %v136_v53 = vadd.f32 %v2427_v28, %v135_v47  ;;  %v791_v28 = vrot.slane %v3087_v40, 7  ;;  %v919_v48 = vrot.slane %v3087_v40, 1  ;;  %v2662_v58 = vpack.c.bf16 %v1884_v46, %v1883_v45 }
  0xee   :  { %v3116_v55 = vmax.f32 %v141_v51, 0.0  ;;  %v530_v60 = vrot.slane %v3097_v44, 5  ;;  %v1049_v62 = vrot.slane %v3087_v40, 2  ;;  %v660_v6 = vrot.slane %v3097_v44, 6 }
  0xef   :  { %v3118_v56 = vmax.f32 %v136_v53, 0.0  ;;  %v1098_v53 = vadd.s32 2, %v3149_v4  ;;  %2687 = vmatpush3.bf16.msra.mxu1 %v2662_v58  ;;  %v1179_v8 = vrot.slane %v3087_v40, 3  ;;  %2663 = vmatpush3.bf16.msra.mxu0 %v2662_v58  ;;  %v4401_v38 = vrot.slane %v3097_v44, 3 }
  0xf0   :  { %152 = vrot.lane.b32.xlu0 %v3097_v44, %s2961_s28  ;;  %v923_v16 = vrot.slane %v3116_v55, 1  ;;  %v1053_v18 = vrot.slane %v3116_v55, 2  ;;  %v1183_v30 = vrot.slane %v3116_v55, 3  ;;  %v532_v5 = vsel %vm529_vm1, %v530_v60, %v531_v11 }
  0xf1   :  { %176 = vrot.lane.b32.xlu1 %v3097_v44, %s2963_s10  ;;  %v533_v2 = vrot.slane %v3118_v56, 5  ;;  %v663_v3 = vrot.slane %v3118_v56, 6  ;;  %v921_v15 = vrot.slane %v3118_v56, 1  ;;  %v1051_v17 = vrot.slane %v3118_v56, 2 }
  0xf2   :  { %v793_v21 = vrot.slane %v3118_v56, 7  ;;  %v1181_v29 = vrot.slane %v3118_v56, 3  ;;  %v4400_v42 = vrot.slane %v3118_v56, 4  ;;  %vm1130_vm13 = vcmp.lt.s32.totalorder %v1098_v53, 16 }
  0xf3   :  { %v534_v19 = vsel %vm529_vm1, %v531_v11, %v533_v2  ;;  %v664_v20 = vsel %vm659_vm3, %v661_v12, %v663_v3  ;;  %v924_v34 = vsel %vm4413_vm2, %v921_v15, %v923_v16  ;;  %v1054_v36 = vsel %vm1047_vm4, %v1051_v17, %v1053_v18 }
  0xf4   :  { %166 = vrot.lane.b32.xlu0 %v3087_v40, %s2962_s9  ;;  %v643_v33 = vsel %vm595_vm5, %v534_v19, 0.0  ;;  %v773_v35 = vsel %vm725_vm6, %v664_v20, 0.0  ;;  %v794_v37 = vsel %vm789_vm7, %v791_v28, %v793_v21  ;;  %v3240_v49 = vsel %vm4410_vm9, %v4399_v39, %v4400_v42 }
  0xf5   :  { %158 = vrot.lane.b32.xlu1 %v3116_v55, %s2961_s28  ;;  %v2695_v47 = vpack.i.bf16 %v643_v33, %v924_v34  ;;  %v2700_v50 = vpack.i.bf16 %v773_v35, %v1054_v36  ;;  %v903_v51 = vsel %vm855_vm8, %v794_v37, 0.0  ;;  %v1184_v52 = vsel %vm1177_vm11, %v1181_v29, %v1183_v30 }
  0xf6   :  { %v922_v57 = vsel %vm4413_vm2, %v919_v48, %v921_v15  ;;  %v3254_v59 = vsel %vm1340_vm10, %v3240_v49, 0.0  ;;  %v2705_v61 = vpack.i.bf16 %v903_v51, %v1184_v52  ;;  %v1052_v0 = vsel %vm1047_vm4, %v1049_v62, %v1051_v17 }
  0xf7   :  { %v1032_v63 = vsel %vm1000_vm12, %v922_v57, 0.0  ;;  %v1162_v9 = vsel %vm1130_vm13, %v1052_v0, 0.0  ;;  %v1182_v10 = vsel %vm1177_vm11, %v1179_v8, %v1181_v29  ;;  %v662_v4 = vsel %vm659_vm3, %v660_v6, %v661_v12 }
  0xf8   :  { %178 = vrot.lane.b32.xlu0 %v3087_v40, %s2963_s10  ;;  %v2710_v7 = vpack.i.bf16 %v532_v5, %v1032_v63  ;;  %v790_v11 = vrot.slane %v3097_v44, 7  ;;  %v2715_v13 = vpack.i.bf16 %v662_v4, %v1162_v9  ;;  %v1292_v14 = vsel %vm1260_vm14, %v1182_v10, 0.0 }
  0xf9   :  { %156 = vrot.lane.b32.xlu1 %v3118_v56, %s2961_s28  ;;  %v192_v19 = vadd.s32 24, %v3089_v41  ;;  %v193_v20 = vadd.s32 32, %v3089_v41  ;;  %v535_v29 = vrot.slane %v3116_v55, 5  ;;  %v665_v31 = vrot.slane %v3116_v55, 6 }
  0xfa   :  { %v792_v15 = vsel %vm789_vm7, %v790_v11, %v791_v28  ;;  %v795_v32 = vrot.slane %v3116_v55, 7  ;;  %v3303_v33 = vand.u32 15, %v196_v23  ;;  %v4402_v36 = vrot.slane %v3097_v44, 1 }
  0xfb   :  { %v2720_v17 = vpack.i.bf16 %v792_v15, %v1292_v14  ;;  %v3290_v12 = vand.u32 15, %v192_v19  ;;  %v3292_v22 = vand.u32 15, %v193_v20  ;;  %v4403_v37 = vrot.slane %v3097_v44, 2 }
  0xfc   :  { %182 = vrot.lane.b32.xlu0 %v3116_v55, %s2963_s10  ;;  %4430 = vst [vmem:[#allocation5_spill] sm:$0xff] %v3303_v33  ;;  %vm465_vm5 = vcmp.ge.s32.totalorder %v449_v25, 0  ;;  %v197_v45 = vadd.s32 64, %v3089_v41  ;;  %v3333_v51 = vsel %vm789_vm7, %v793_v21, %v795_v32  ;;  %v3336_v52 = vadd.s32 1, %v3303_v33 }
  0xfd   :  { %168 = vrot.lane.b32.xlu1 %v3118_v56, %s2962_s9  ;;  %v970_v24 = vadd.s32 1, %v3290_v12  ;;  %v1100_v26 = vadd.s32 2, %v3290_v12  ;;  %v1230_v27 = vadd.s32 3, %v3290_v12  ;;  %v581_v28 = vadd.s32 4294967293, %v3292_v22 }
  0xfe   :  { %v3306_v34 = vadd.s32 4294967294, %v3292_v22  ;;  %v3309_v35 = vadd.s32 4294967295, %v3292_v22  ;;  %v3351_v21 = vadd.s32 2, %v3303_v33  ;;  %v3354_v53 = vadd.s32 4294967294, %v3312_v54 }
  0xff   :  { %vm1002_vm15 = vcmp.lt.s32.totalorder %v970_v24, 16  ;;  %vm1132_vm6 = vcmp.lt.s32.totalorder %v1100_v26, 16  ;;  %vm1262_vm8 = vcmp.lt.s32.totalorder %v1230_v27, 16  ;;  %vm597_vm10 = vcmp.ge.s32.totalorder %v581_v28, 0 }
 0x100   :  { %170 = vrot.lane.b32.xlu0 %v3116_v55, %s2962_s9  ;;  %vm727_vm12 = vcmp.ge.s32.totalorder %v3306_v34, 0  ;;  %vm857_vm13 = vcmp.ge.s32.totalorder %v3309_v35, 0  ;;  %v3361_v57 = vsel %vm1047_vm4, %v4403_v37, %v1049_v62  ;;  %v3364_v58 = vadd.s32 3, %v3303_v33 }
 0x101   :  { %180 = vrot.lane.b32.xlu1 %v3118_v56, %s2963_s10  ;;  %v3378_v0 = vsel %vm465_vm5, %v3240_v49, 0.0  ;;  %v3380_v1 = vand.u32 15, %v197_v45  ;;  %v194_v62 = vadd.s32 40, %v3089_v41  ;;  %v195_v5 = vadd.s32 48, %v3089_v41 }
 0x102   :  { %v200_v15 = vadd.s32 88, %v3089_v41  ;;  %vm1006_vm14 = vcmp.lt.s32.totalorder %v3336_v52, 16  ;;  %vm723_vm5 = vcmp.ge.s32.totalorder %v3354_v53, 0  ;;  %v201_v34 = vadd.s32 96, %v3089_v41 }
 0x103   :  { %4431 = vst [vmem:[#allocation6_spill] sm:$0xff] %v3380_v1  ;;  %v3411_v42 = vand.u32 15, %v194_v62  ;;  %v3430_v27 = vand.u32 15, %v195_v5  ;;  %v3563_v53 = vadd.s32 80, %v3089_v41 }
 0x104   :  { %2696 = vrot.lane.b32.xlu0 %v2695_v47, %s2963_s10  ;;  %v536_v47 = vsel %vm529_vm1, %v533_v2, %v535_v29  ;;  %v3341_v2 = vadd.s32 4294967293, %v3312_v54 }
 0x105   :  { %2701 = vrot.lane.b32.xlu1 %v2700_v50, %s2962_s9  ;;  %v666_v50 = vsel %vm659_vm3, %v663_v3, %v665_v31  ;;  %v3348_v3 = vsel %vm4413_vm2, %v4402_v36, %v919_v48  ;;  %v3372_v48 = vsel %vm1177_vm11, %v4401_v38, %v1179_v8 }
 0x108   :  { %2706 = vrot.lane.b32.xlu0 %v2705_v61, %s2961_s28  ;;  %v3367_v61 = vadd.s32 4294967295, %v3312_v54 }
 0x10c   :  { %2711 = vrot.lane.b32.xlu0 %v2710_v7, %s2963_s10 }
 0x110   :  { %2716 = vrot.lane.b32.xlu0 %v2715_v13, %s2962_s9 }
 0x114   :  { %2721 = vrot.lane.b32.xlu0 %v2720_v17, %s2961_s28 }
 0x15e   :  { %v3317_v43 = vpop.permute.xlu0 %154 }
 0x15f   :  { %v3320_v46 = vpop.permute.xlu1 %164  ;;  %v4407_v13 = vrot.slane %v3317_v43, 1  ;;  %v4416_v26 = vrot.slane %v3317_v43, 2  ;;  %v4406_v28 = vrot.slane %v3317_v43, 3 }
 0x160   :  { %v4414_v35 = vrot.slane %v3320_v46, 1 }
 0x162   :  { %v3374_v63 = vpop.permute.xlu0 %152 }
 0x163   :  { %v3384_v7 = vpop.permute.xlu1 %176  ;;  %v925_v9 = vrot.slane %v3374_v63, 1  ;;  %v1055_v10 = vrot.slane %v3374_v63, 2  ;;  %v1185_v8 = vrot.slane %v3374_v63, 3  ;;  %v4405_v4 = vrot.slane %v3374_v63, 5 }
 0x164   :  { %v4409_v49 = vrot.slane %v3374_v63, 6  ;;  %v4404_v14 = vrot.slane %v3374_v63, 7 }
 0x165   :  { %v926_v17 = vsel %vm4413_vm2, %v923_v16, %v925_v9  ;;  %v1056_v19 = vsel %vm1047_vm4, %v1053_v18, %v1055_v10  ;;  %v1186_v20 = vsel %vm1177_vm11, %v1183_v30, %v1185_v8  ;;  %v538_v23 = vsel %vm529_vm1, %v535_v29, %v4405_v4 }
 0x166   :  { %v3406_v25 = vpop.permute.xlu0 %166  ;;  %v1034_v45 = vsel %vm1002_vm15, %v926_v17, 0.0  ;;  %v1164_v39 = vsel %vm1132_vm6, %v1056_v19, 0.0  ;;  %v1294_v16 = vsel %vm1262_vm8, %v1186_v20, 0.0  ;;  %v645_v30 = vsel %vm597_vm10, %v538_v23, 0.0 }
 0x167   :  { %v3413_v38 = vpop.permute.xlu1 %158  ;;  %v2725_v18 = vpack.i.bf16 %v536_v47, %v1034_v45  ;;  %v2730_v36 = vpack.i.bf16 %v666_v50, %v1164_v39  ;;  %v928_v29 = vsel %vm4413_vm2, %v925_v9, %v4407_v13  ;;  %vm593_vm15 = vcmp.ge.s32.totalorder %v3341_v2, 0 }
 0x168   :  { %v668_v24 = vsel %vm659_vm3, %v665_v31, %v4409_v49  ;;  %v798_v39 = vsel %vm789_vm7, %v795_v32, %v4404_v14  ;;  %v3437_v31 = vadd.s32 4294967293, %v3380_v1  ;;  %v3440_v47 = vadd.s32 4294967295, %v3380_v1 }
 0x169   :  { %2726 = vrot.lane.b32.xlu1 %v2725_v18, %s2963_s10  ;;  %2731 = vrot.lane.b32.xlu0 %v2730_v36, %s2962_s9  ;;  %v3442_v50 = vand.u32 15, %v200_v15  ;;  %v2735_v32 = vpack.i.bf16 %v3333_v51, %v1294_v16  ;;  %v2740_v5 = vpack.i.bf16 %v645_v30, %v928_v29  ;;  %v1058_v36 = vsel %vm1047_vm4, %v1055_v10, %v4416_v26 }
 0x16a   :  { %v3444_v62 = vpop.permute.xlu0 %178  ;;  %v3451_v9 = vadd.s32 4294967294, %v3380_v1  ;;  %v775_v19 = vsel %vm727_vm12, %v668_v24, 0.0  ;;  %v905_v15 = vsel %vm857_vm13, %v798_v39, 0.0  ;;  %v1188_v51 = vsel %vm1177_vm11, %v1185_v8, %v4406_v28 }
 0x16b   :  { %v3453_v17 = vpop.permute.xlu1 %156  ;;  %v4408_v20 = vrot.slane %v3413_v38, 1  ;;  %vm1136_vm6 = vcmp.lt.s32.totalorder %v3351_v21, 16  ;;  %v3466_v23 = vadd.s32 2, %v3411_v42  ;;  %v3469_v45 = vadd.s32 4294967293, %v3430_v27 }
 0x16c   :  { %v4412_v10 = vrot.slane %v3453_v17, 5  ;;  %vm853_vm8 = vcmp.ge.s32.totalorder %v3367_v61, 0  ;;  %v3477_v8 = vadd.s32 1, %v3442_v50  ;;  %v3480_v16 = vadd.s32 1, %v3411_v42 }
 0x16d   :  { %2736 = vrot.lane.b32.xlu1 %v2735_v32, %s2961_s28  ;;  %2741 = vrot.lane.b32.xlu0 %v2740_v5, %s2963_s10  ;;  %v3483_v18 = vadd.s32 3, %v3411_v42  ;;  %v2745_v29 = vpack.i.bf16 %v775_v19, %v1058_v36  ;;  %v2750_v24 = vpack.i.bf16 %v905_v15, %v1188_v51  ;;  %v543_v39 = vrot.slane %v3413_v38, 5 }
 0x16e   :  { %v3485_v30 = vpop.permute.xlu0 %182  ;;  %vm1771_vm10 = vcmask 261120   ;;  %v3489_v32 = vadd.s32 2, %v3442_v50  ;;  %v934_v37 = vsel %vm4413_vm2, %v4408_v20, %v4414_v35  ;;  %v4418_v4 = vrot.slane %v3413_v38, 2 }
 0x16f   :  { %v3491_v5 = vpop.permute.xlu1 %168  ;;  %v4411_v14 = vrot.slane %v3485_v30, 5  ;;  %v4415_v36 = vrot.slane %v3485_v30, 6  ;;  %vm1266_vm12 = vcmp.lt.s32.totalorder %v3364_v58, 16  ;;  %vm601_vm13 = vcmp.ge.s32.totalorder %v3437_v31, 0 }
 0x170   :  { %v544_v19 = vsel %vm529_vm1, %v4412_v10, %v543_v39  ;;  %v4419_v15 = vrot.slane %v3453_v17, 6  ;;  %v3507_v51 = vand.u32 15, %v201_v34  ;;  %v3510_v28 = vadd.s32 72, %v3089_v41 }
 0x171   :  { %2746 = vrot.lane.b32.xlu1 %v2745_v29, %s2962_s9  ;;  %2751 = vrot.lane.b32.xlu0 %v2750_v24, %s2961_s28  ;;  %v576_v13 = vsel %vm529_vm1, %v4411_v14, %v530_v60  ;;  %v4420_v20 = vrot.slane %v3320_v46, 2  ;;  %v706_v34 = vsel %vm659_vm3, %v4415_v36, %v660_v6  ;;  %v4417_v49 = vrot.slane %v3485_v30, 7 }
 0x172   :  { %vm861_vm9 = vcmp.ge.s32.totalorder %v3440_v47, 0  ;;  %v3527_v29 = vpop.permute.xlu0 %170  ;;  %v1038_v24 = vsel %vm1006_vm14, %v934_v37, 0.0  ;;  %v641_v60 = vsel %vm593_vm15, %v576_v13, 0.0  ;;  %v673_v14 = vrot.slane %v3413_v38, 6 }
 0x173   :  { %v4423_v10 = vrot.slane %v3413_v38, 3  ;;  %vm1804_vm2 = vcmask 785408   ;;  %v3535_v35 = vpop.permute.xlu1 %180  ;;  %v2765_v6 = vpack.i.bf16 %v544_v19, %v1038_v24  ;;  %v2755_v36 = vpack.i.bf16 %v641_v60, %v3348_v3 }
 0x174   :  { %v1064_v52 = vsel %vm1047_vm4, %v4418_v4, %v4420_v20  ;;  %v1193_v37 = vrot.slane %v3320_v46, 3  ;;  %v674_v2 = vsel %vm659_vm3, %v4419_v15, %v673_v14  ;;  %v771_v13 = vsel %vm723_vm5, %v706_v34, 0.0 }
 0x175   :  { %v545_v19 = vrot.slane %v3320_v46, 5  ;;  %2766 = vrot.lane.b32.xlu1 %v2765_v6, %s2963_s10  ;;  %2756 = vrot.lane.b32.xlu0 %v2755_v36, %s2963_s10  ;;  %v803_v3 = vrot.slane %v3413_v38, 7  ;;  %v836_v24 = vsel %vm789_vm7, %v4417_v49, %v790_v11  ;;  %vm731_vm14 = vcmp.ge.s32.totalorder %v3451_v9, 0 }
 0x176   :  { %vm1134_vm15 = vcmp.lt.s32.totalorder %v3466_v23, 16  ;;  %v2697_v34 = vpop.permute.xlu0 %2696  ;;  %v1168_v36 = vsel %vm1136_vm6, %v1064_v52, 0.0  ;;  %v1194_v6 = vsel %vm1177_vm11, %v4423_v10, %v1193_v37  ;;  %v675_v49 = vrot.slane %v3320_v46, 6 }
 0x177   :  { %v546_v11 = vsel %vm529_vm1, %v543_v39, %v545_v19  ;;  %v2699_v4 = vunpack.i.h.bf16 %v2697_v34  ;;  %v2698_v15 = vunpack.i.l.bf16 %v2697_v34  ;;  %v2702_v20 = vpop.permute.xlu1 %2701  ;;  %v2775_v60 = vpack.i.bf16 %v674_v2, %v1168_v36 }
 0x178   :  { %v2760_v26 = vpack.i.bf16 %v771_v13, %v3361_v57  ;;  %v2704_v1 = vunpack.i.h.bf16 %v2702_v20  ;;  %v2703_v33 = vunpack.i.l.bf16 %v2702_v20  ;;  %v4432_v21 = vrot.slane %v3453_v17, 7 }
 0x179   :  { %v901_v10 = vsel %vm853_vm8, %v836_v24, 0.0  ;;  %2776 = vrot.lane.b32.xlu1 %v2775_v60, %s2962_s9  ;;  %v1823_v39 = vsel %vm1771_vm10, %v3118_v56, %v2698_v15  ;;  %v1774_v2 = vsel %vm1771_vm10, %v3378_v0, %v2699_v4  ;;  %v4433_v57 = vrot.slane %v3320_v46, 7 }
 0x17a   :  { %v804_v52 = vsel %vm789_vm7, %v4432_v21, %v803_v3  ;;  %2761 = vrot.lane.b32.xlu0 %v2760_v26, %s2962_s9  ;;  %v1059_v13 = vrot.slane %v3453_v17, 2  ;;  %vm1010_vm5 = vcmp.lt.s32.totalorder %v3477_v8, 16  ;;  %vm599_vm6 = vcmp.ge.s32.totalorder %v3469_v45, 0  ;;  %v2707_v61 = vpop.permute.xlu0 %2706 }
 0x17b   :  { %v806_v20 = vsel %vm789_vm7, %v803_v3, %v4433_v57  ;;  %v1298_v26 = vsel %vm1266_vm12, %v1194_v6, 0.0  ;;  %v649_v15 = vsel %vm601_vm13, %v546_v11, 0.0  ;;  %v935_v24 = vrot.slane %v3406_v25, 1 }
 0x17c   :  { %v1195_v0 = vrot.slane %v3406_v25, 3  ;;  %v2709_v4 = vunpack.i.h.bf16 %v2707_v61  ;;  %v2708_v60 = vunpack.i.l.bf16 %v2707_v61  ;;  %v2780_v3 = vpack.i.bf16 %v804_v52, %v1298_v26 }
 0x17d   :  { %v2770_v34 = vpack.i.bf16 %v901_v10, %v3372_v48  ;;  %v1839_v36 = vsel %vm46_vm0, %v1823_v39, %v2703_v33  ;;  %v1790_v21 = vsel %vm46_vm0, %v1774_v2, %v2704_v1  ;;  %v909_v58 = vsel %vm861_vm9, %v806_v20, 0.0 }
 0x17e   :  { %v676_v31 = vsel %vm659_vm3, %v673_v14, %v675_v49  ;;  %2781 = vrot.lane.b32.xlu1 %v2780_v3, %s2961_s28  ;;  %v1855_v6 = vsel %vm1804_vm2, %v1839_v36, %v2708_v60  ;;  %v1807_v11 = vsel %vm1804_vm2, %v1790_v21, %v2709_v4  ;;  %v4434_v33 = vrot.slane %v3317_v43, 2 }
 0x17f   :  { %2771 = vrot.lane.b32.xlu0 %v2770_v34, %s2961_s28  ;;  %v939_v1 = vrot.slane %v3527_v29, 1  ;;  %vm1004_vm9 = vcmp.lt.s32.totalorder %v3480_v16, 16  ;;  %vm1140_vm8 = vcmp.lt.s32.totalorder %v3489_v32, 16  ;;  %2034 = vmatprep.mubr.f32.mxu1 %v1855_v6  ;;  %v4435_v14 = vrot.slane %v3320_v46, 1 }
 0x180   :  { %v1060_v48 = vsel %vm1047_vm4, %v4434_v33, %v1059_v13  ;;  %vm4436_vm12 = vcmask 1046528   ;;  %v1196_v10 = vsel %vm1177_vm11, %v1193_v37, %v1195_v0  ;;  %v1065_v52 = vrot.slane %v3406_v25, 2  ;;  %2035 = vmatmul.mubr.f32.vlgmr.msra.gmra.mrb[0].mxu1 %v1807_v11 }
 0x181   :  { %v936_v47 = vsel %vm4436_vm12, %v4435_v14, %v935_v24  ;;  %v539_v39 = vrot.slane %v3317_v43, 5  ;;  %v2795_v57 = vpack.i.bf16 %v909_v58, %v1196_v10  ;;  %v551_v20 = vrot.slane %v3527_v29, 5  ;;  %vm4437_vm13 = vmmov %vm4436_vm12 }
 0x182   :  { %v2785_v2 = vpack.i.bf16 %v649_v15, %v936_v47  ;;  %v941_v61 = vrot.slane %v3384_v7, 1  ;;  %v779_v26 = vsel %vm731_vm14, %v676_v31, 0.0  ;;  %v669_v4 = vrot.slane %v3317_v43, 6 }
 0x183   :  { %v1166_v60 = vsel %vm1134_vm15, %v1060_v48, 0.0  ;;  %v929_v37 = vrot.slane %v3453_v17, 1  ;;  %2796 = vrot.lane.b32.xlu0 %v2795_v57, %s2961_s28  ;;  %v549_v15 = vrot.slane %v3491_v5, 5  ;;  %v4438_v3 = vrot.slane %v3453_v17, 5  ;;  %vm4442_vm15 = vmmov %vm4436_vm12 }
 0x184   :  { %2786 = vrot.lane.b32.xlu1 %v2785_v2, %s2963_s10  ;;  %v942_v9 = vsel %vm4437_vm13, %v939_v1, %v941_v61  ;;  %v4427_v23 = vrot.slane %v3527_v29, 2  ;;  %vm1264_vm14 = vcmp.lt.s32.totalorder %v3483_v18, 16  ;;  %v4439_v36 = vrot.slane %v3320_v46, 2 }
 0x185   :  { %v542_v34 = vsel %vm529_vm1, %v539_v39, %v4438_v3  ;;  %v4440_v58 = vrot.slane %v3374_v63, 6  ;;  %v589_v6 = vadd.s32 4294967293, %v3507_v51  ;;  %v3661_v11 = vand.u32 15, %v3510_v28 }
 0x186   :  { %v1066_v21 = vsel %vm1047_vm4, %v4439_v36, %v1065_v52  ;;  %v552_v14 = vsel %vm529_vm1, %v549_v15, %v551_v20  ;;  %v4424_v47 = vrot.slane %v3384_v7, 2  ;;  %v1042_v10 = vsel %vm1010_vm5, %v942_v9, 0.0 }
 0x187   :  { %v670_v31 = vsel %vm659_vm3, %v4440_v58, %v669_v4  ;;  %v2790_v33 = vpack.i.bf16 %v779_v26, %v1066_v21  ;;  %v647_v2 = vsel %vm599_vm6, %v542_v34, 0.0  ;;  %v4441_v57 = vrot.slane %v3413_v38, 1 }
 0x188   :  { %v2810_v48 = vpack.i.bf16 %v670_v31, %v1166_v60  ;;  %v4426_v28 = vrot.slane %v3527_v29, 6  ;;  %v4443_v26 = vrot.slane %v3317_v43, 1  ;;  %v1072_v45 = vsel %vm1047_vm4, %v4427_v23, %v4424_v47 }
 0x189   :  { %v932_v3 = vsel %vm4442_vm15, %v929_v37, %v4441_v57  ;;  %2791 = vrot.lane.b32.xlu1 %v2790_v33, %s2962_s9  ;;  %v1189_v8 = vrot.slane %v3453_v17, 3  ;;  %v3687_v9 = vadd.s32 4294967294, %v3430_v27  ;;  %v679_v34 = vrot.slane %v3491_v5, 6 }
 0x18a   :  { %2811 = vrot.lane.b32.xlu0 %v2810_v48, %s2962_s9  ;;  %v930_v60 = vsel %vm4436_vm12, %v4443_v26, %v929_v37  ;;  %v1106_v36 = vadd.s32 2, %v3661_v11  ;;  %v3692_v21 = vand.u32 15, %v3563_v53  ;;  %v3695_v37 = vadd.s32 4294967295, %v3430_v27 }
 0x18b   :  { %v2800_v58 = vpack.i.bf16 %v552_v14, %v1042_v10  ;;  %v2820_v31 = vpack.i.bf16 %v647_v2, %v932_v3  ;;  %v4425_v33 = vrot.slane %v3384_v7, 5  ;;  %v1238_v48 = vadd.s32 3, %v3442_v50 }
 0x18c   :  { %v1036_v57 = vsel %vm1004_vm9, %v930_v60, 0.0  ;;  %v682_v26 = vsel %vm659_vm3, %v679_v34, %v4426_v28  ;;  %v1172_v53 = vsel %vm1140_vm8, %v1072_v45, 0.0  ;;  %vm605_vm5 = vcmp.ge.s32.totalorder %v589_v6, 0  ;;  %vm4447_vm8 = vmmov %vm4436_vm12 }
 0x18d   :  { %2801 = vrot.lane.b32.xlu1 %v2800_v58, %s2963_s10  ;;  %v4444_v14 = vrot.slane %v3317_v43, 3  ;;  %v554_v10 = vsel %vm529_vm1, %v551_v20, %v4425_v33  ;;  %v1199_v2 = vrot.slane %v3527_v29, 3  ;;  %v4429_v32 = vrot.slane %v3491_v5, 2 }
 0x18e   :  { %2821 = vrot.lane.b32.xlu0 %v2820_v31, %s2963_s10  ;;  %v4445_v3 = vrot.slane %v3374_v63, 5  ;;  %v4428_v45 = vrot.slane %v3444_v62, 1  ;;  %vm1138_vm6 = vcmp.lt.s32.totalorder %v1106_v36, 16  ;;  %v587_v58 = vadd.s32 4294967293, %v3692_v21 }
 0x18f   :  { %v1190_v16 = vsel %vm1177_vm11, %v4444_v14, %v1189_v8  ;;  %v2825_v47 = vpack.i.bf16 %v682_v26, %v1172_v53  ;;  %v1201_v14 = vrot.slane %v3384_v7, 3  ;;  %vm1270_vm9 = vcmp.lt.s32.totalorder %v1238_v48, 16 }
 0x190   :  { %v540_v60 = vsel %vm529_vm1, %v4445_v3, %v539_v39  ;;  %v799_v20 = vrot.slane %v3317_v43, 7  ;;  %v1296_v33 = vsel %vm1264_vm14, %v1190_v16, 0.0  ;;  %v653_v28 = vsel %vm605_vm5, %v554_v10, 0.0 }
 0x191   :  { %v2805_v31 = vpack.i.bf16 %v540_v60, %v1036_v57  ;;  %v811_v23 = vrot.slane %v3527_v29, 7  ;;  %v1202_v39 = vsel %vm1177_vm11, %v1199_v2, %v1201_v14  ;;  %v1068_v18 = vsel %vm1047_vm4, %v1065_v52, %v4429_v32 }
 0x192   :  { %2826 = vrot.lane.b32.xlu0 %v2825_v47, %s2962_s9  ;;  %v847_v6 = vadd.s32 4294967295, %v3692_v21  ;;  %v3745_v57 = vadd.s32 1, %v3661_v11  ;;  %v4446_v26 = vrot.slane %v3374_v63, 7  ;;  %v944_v53 = vsel %vm4447_vm8, %v941_v61, %v4428_v45 }
 0x193   :  { %2806 = vrot.lane.b32.xlu1 %v2805_v31, %s2963_s10  ;;  %v809_v16 = vrot.slane %v3491_v5, 7  ;;  %v677_v10 = vrot.slane %v3406_v25, 6  ;;  %v2835_v3 = vpack.i.bf16 %v653_v28, %v944_v53  ;;  %vm729_vm13 = vcmp.ge.s32.totalorder %v3687_v9, 0 }
 0x194   :  { %v800_v47 = vsel %vm789_vm7, %v4446_v26, %v799_v20  ;;  %vm859_vm14 = vcmp.ge.s32.totalorder %v3695_v37, 0  ;;  %v1302_v31 = vsel %vm1270_vm9, %v1202_v39, 0.0  ;;  %v1170_v26 = vsel %vm1138_vm6, %v1068_v18, 0.0  ;;  %vm4450_vm6 = vmmov %vm4447_vm8 }
 0x195   :  { %v2815_v52 = vpack.i.bf16 %v800_v47, %v1296_v33  ;;  %v812_v60 = vsel %vm789_vm7, %v809_v16, %v811_v23  ;;  %vm603_vm15 = vcmp.ge.s32.totalorder %v587_v58, 0  ;;  %v4448_v61 = vrot.slane %v3453_v17, 6  ;;  %vm4453_vm8 = vmmov %vm4450_vm6 }
 0x196   :  { %2836 = vrot.lane.b32.xlu0 %v2835_v3, %s2963_s10  ;;  %v547_v33 = vrot.slane %v3406_v25, 5  ;;  %vm863_vm12 = vcmp.ge.s32.totalorder %v847_v6, 0  ;;  %v202_v47 = vadd.s32 104, %v3089_v41  ;;  %v678_v36 = vsel %vm659_vm3, %v675_v49, %v677_v10 }
 0x197   :  { %2816 = vrot.lane.b32.xlu1 %v2815_v52, %s2961_s28  ;;  %v672_v28 = vsel %vm659_vm3, %v669_v4, %v4448_v61  ;;  %v937_v48 = vrot.slane %v3491_v5, 1  ;;  %vm1008_vm5 = vcmp.lt.s32.totalorder %v3745_v57, 16  ;;  %v849_v39 = vadd.s32 4294967295, %v3507_v51 }
 0x198   :  { %v2830_v18 = vpack.i.bf16 %v812_v60, %v1302_v31  ;;  %v2855_v53 = vpack.i.bf16 %v678_v36, %v1170_v26  ;;  %v550_v4 = vsel %vm529_vm1, %v547_v33, %v549_v15  ;;  %v204_v52 = vadd.s32 120, %v3089_v41 }
 0x199   :  { %v777_v3 = vsel %vm729_vm13, %v672_v28, 0.0  ;;  %v4449_v61 = vrot.slane %v3413_v38, 2  ;;  %v940_v60 = vsel %vm4450_vm6, %v937_v48, %v939_v1  ;;  %v203_v31 = vadd.s32 112, %v3089_v41 }
 0x19a   :  { %2856 = vrot.lane.b32.xlu0 %v2855_v53, %s2962_s9  ;;  %v4451_v15 = vrot.slane %v3453_v17, 7  ;;  %v807_v26 = vrot.slane %v3406_v25, 7  ;;  %v1236_v28 = vadd.s32 3, %v3661_v11  ;;  %v3801_v36 = vand.u32 15, %v202_v47 }
 0x19b   :  { %v1062_v49 = vsel %vm1047_vm4, %v1059_v13, %v4449_v61  ;;  %2831 = vrot.lane.b32.xlu1 %v2830_v18, %s2961_s28  ;;  %v651_v13 = vsel %vm603_vm15, %v550_v4, 0.0  ;;  %v1197_v1 = vrot.slane %v3491_v5, 3  ;;  %vm865_vm9 = vcmp.ge.s32.totalorder %v849_v39, 0 }
 0x19c   :  { %v802_v9 = vsel %vm789_vm7, %v799_v20, %v4451_v15  ;;  %v3806_v61 = vadd.s32 4294967294, %v3692_v21  ;;  %v2840_v18 = vpack.i.bf16 %v777_v3, %v1062_v49  ;;  %v2865_v53 = vpack.i.bf16 %v651_v13, %v940_v60 }
 0x19d   :  { %v810_v45 = vsel %vm789_vm7, %v807_v26, %v809_v16  ;;  %v813_v20 = vrot.slane %v3384_v7, 7  ;;  %v907_v15 = vsel %vm859_vm14, %v802_v9, 0.0  ;;  %v4452_v47 = vrot.slane %v3413_v38, 3 }
 0x19e   :  { %v1200_v4 = vsel %vm1177_vm11, %v1197_v1, %v1199_v2  ;;  %v3820_v32 = vand.u32 15, %v203_v31  ;;  %2866 = vrot.lane.b32.xlu0 %v2865_v53, %s2963_s10  ;;  %v938_v37 = vsel %vm4453_vm8, %v935_v24, %v937_v48  ;;  %v1110_v3 = vadd.s32 2, %v3801_v36  ;;  %v1901_v24 = vld [vmem:[%s4394_s3 + $0x100] sm:$0xff] }
 0x19f   :  { %v1192_v58 = vsel %vm1177_vm11, %v1189_v8, %v4452_v47  ;;  %2841 = vrot.lane.b32.xlu1 %v2840_v18, %s2962_s9  ;;  %v814_v16 = vsel %vm789_vm7, %v811_v23, %v813_v20  ;;  %v1075_v8 = vrot.slane %v3535_v35, 2  ;;  %v911_v2 = vsel %vm863_vm12, %v810_v45, 0.0  ;;  %v1902_v23 = vld [vmem:[%s4394_s3 + $0x108] sm:$0xff] }
 0x1a0   :  { %v1203_v49 = vrot.slane %v3444_v62, 3  ;;  %v3834_v60 = vand.u32 15, %v204_v52  ;;  %v2845_v31 = vpack.i.bf16 %v907_v15, %v1192_v58  ;;  %v2880_v9 = vpack.i.bf16 %v911_v2, %v1200_v4 }
 0x1a1   :  { %vm1268_vm13 = vcmp.lt.s32.totalorder %v1236_v28, 16  ;;  %v1073_v13 = vrot.slane %v3444_v62, 2  ;;  %v1040_v45 = vsel %vm1008_vm5, %v938_v37, 0.0  ;;  %v913_v6 = vsel %vm865_vm9, %v814_v16, 0.0  ;;  %vm4457_vm5 = vmmov %vm4450_vm6 }
 0x1a2   :  { %vm733_vm14 = vcmp.ge.s32.totalorder %v3806_v61, 0  ;;  %v591_v48 = vadd.s32 4294967293, %v3820_v32  ;;  %2881 = vrot.lane.b32.xlu0 %v2880_v9, %s2961_s28  ;;  %v1198_v52 = vsel %vm1177_vm11, %v1195_v0, %v1197_v1  ;;  %vm1142_vm15 = vcmp.lt.s32.totalorder %v1110_v3, 16  ;;  %vm4460_vm8 = vmmov %vm4457_vm5 }
 0x1a3   :  { %2846 = vrot.lane.b32.xlu1 %v2845_v31, %s2961_s28  ;;  %v1076_v57 = vsel %vm1047_vm4, %v1073_v13, %v1075_v8  ;;  %v557_v39 = vrot.slane %v3535_v35, 5  ;;  %v548_v18 = vsel %vm529_vm1, %v545_v19, %v547_v33  ;;  %v1204_v53 = vsel %vm1177_vm11, %v1201_v14, %v1203_v49 }
 0x1a4   :  { %v685_v0 = vrot.slane %v3444_v62, 6  ;;  %v3868_v1 = vpack.c.bf16 %v1902_v23, %v1901_v24  ;;  %v2850_v15 = vpack.i.bf16 %v548_v18, %v1040_v45  ;;  %v2885_v47 = vpack.i.bf16 %v913_v6, %v1204_v53 }
 0x1a5   :  { %v555_v58 = vrot.slane %v3444_v62, 5  ;;  %v719_v4 = vadd.s32 4294967294, %v3507_v51  ;;  %v1300_v37 = vsel %vm1268_vm13, %v1198_v52, 0.0  ;;  %v683_v19 = vrot.slane %v3384_v7, 6 }
 0x1a6   :  { %v1174_v33 = vsel %vm1142_vm15, %v1076_v57, 0.0  ;;  %v945_v16 = vrot.slane %v3535_v35, 1  ;;  %2665 = vmatprep.subr.bf16.mxu0 %v3868_v1  ;;  %2886 = vrot.lane.b32.xlu0 %v2885_v47, %s2961_s28  ;;  %vm607_vm12 = vcmp.ge.s32.totalorder %v591_v48, 0  ;;  %v817_v3 = vrot.slane %v3535_v35, 7 }
 0x1a7   :  { %2851 = vrot.lane.b32.xlu1 %v2850_v15, %s2963_s10  ;;  %v558_v14 = vsel %vm529_vm1, %v555_v58, %v557_v39  ;;  %v851_v28 = vadd.s32 4294967295, %v3820_v32  ;;  %v4454_v2 = vrot.slane %v3320_v46, 7  ;;  %v686_v9 = vsel %vm659_vm3, %v683_v19, %v685_v0 }
 0x1a8   :  { %v947_v24 = vrot.slane %v3485_v30, 1  ;;  %v980_v23 = vadd.s32 1, %v3801_v36  ;;  %v2895_v6 = vpack.i.bf16 %v686_v9, %v1174_v33  ;;  %v680_v48 = vsel %vm659_vm3, %v677_v10, %v679_v34 }
 0x1a9   :  { %v808_v31 = vsel %vm789_vm7, %v4454_v2, %v807_v26  ;;  %v815_v52 = vrot.slane %v3444_v62, 7  ;;  %v4455_v26 = vrot.slane %v3527_v29, 2  ;;  %v4456_v57 = vrot.slane %v3491_v5, 2 }
 0x1aa   :  { %v2860_v45 = vpack.i.bf16 %v808_v31, %v1300_v37  ;;  %v655_v53 = vsel %vm607_vm12, %v558_v14, 0.0  ;;  %v948_v15 = vsel %vm4457_vm5, %v945_v16, %v947_v24  ;;  %v1205_v47 = vrot.slane %v3535_v35, 3  ;;  %2896 = vrot.lane.b32.xlu0 %v2895_v6, %s2962_s9 }
 0x1ab   :  { %v1070_v18 = vsel %vm1047_vm4, %v4456_v57, %v4455_v26  ;;  %v4458_v37 = vrot.slane %v3527_v29, 6  ;;  %vm735_vm6 = vcmp.ge.s32.totalorder %v719_v4, 0  ;;  %v818_v10 = vsel %vm789_vm7, %v815_v52, %v817_v3 }
 0x1ac   :  { %2861 = vrot.lane.b32.xlu1 %v2860_v45, %s2961_s28  ;;  %vm867_vm9 = vcmp.ge.s32.totalorder %v851_v28, 0  ;;  %v781_v33 = vsel %vm733_vm14, %v680_v48, 0.0  ;;  %v1207_v14 = vrot.slane %v3485_v30, 3  ;;  %v2905_v31 = vpack.i.bf16 %v655_v53, %v948_v15 }
 0x1ad   :  { %v684_v34 = vsel %vm659_vm3, %v4458_v37, %v683_v19  ;;  %v2870_v2 = vpack.i.bf16 %v781_v33, %v1070_v18  ;;  %v1077_v9 = vrot.slane %v3485_v30, 2  ;;  %v1112_v45 = vadd.s32 2, %v3834_v60 }
 0x1ae   :  { %v783_v6 = vsel %vm735_vm6, %v684_v34, 0.0  ;;  %v915_v26 = vsel %vm867_vm9, %v818_v10, 0.0  ;;  %v1208_v4 = vsel %vm1177_vm11, %v1205_v47, %v1207_v14  ;;  %v687_v19 = vrot.slane %v3535_v35, 6  ;;  %2906 = vrot.lane.b32.xlu0 %v2905_v31, %s2963_s10 }
 0x1af   :  { %v4459_v61 = vrot.slane %v3444_v62, 1  ;;  %vm1012_vm13 = vcmp.lt.s32.totalorder %v980_v23, 16  ;;  %v1240_v48 = vadd.s32 3, %v3801_v36  ;;  %v4461_v57 = vrot.slane %v3384_v7, 2 }
 0x1b0   :  { %2871 = vrot.lane.b32.xlu1 %v2870_v2, %s2962_s9  ;;  %v2920_v15 = vpack.i.bf16 %v915_v26, %v1208_v4  ;;  %v4462_v37 = vrot.slane %v3097_v44, 2  ;;  %vm1144_vm14 = vcmp.lt.s32.totalorder %v1112_v45, 16  ;;  %v4463_v33 = vrot.slane %v3485_v30, 6 }
 0x1b1   :  { %v946_v28 = vsel %vm4460_vm8, %v4459_v61, %v945_v16  ;;  %v1074_v18 = vsel %vm1047_vm4, %v4461_v57, %v1073_v13  ;;  %v1206_v13 = vsel %vm1177_vm11, %v1203_v49, %v1205_v47  ;;  %vm1272_vm15 = vcmp.lt.s32.totalorder %v1240_v48, 16 }
 0x1b2   :  { %v2875_v53 = vpack.i.bf16 %v783_v6, %v1074_v18  ;;  %v1096_v34 = vsel %vm1047_vm4, %v1077_v9, %v4462_v37  ;;  %v1044_v10 = vsel %vm1012_vm13, %v946_v28, 0.0  ;;  %v689_v16 = vsel %vm659_vm3, %v687_v19, %v4463_v33  ;;  %2921 = vrot.lane.b32.xlu0 %v2920_v15, %s2961_s28 }
 0x1b3   :  { %v721_v23 = vadd.s32 4294967294, %v3820_v32  ;;  %v4464_v2 = vrot.slane %v3384_v7, 5  ;;  %v1176_v45 = vsel %vm1144_vm14, %v1096_v34, 0.0  ;;  %v1304_v4 = vsel %vm1272_vm15, %v1206_v13, 0.0 }
 0x1b4   :  { %2876 = vrot.lane.b32.xlu1 %v2875_v53, %s2962_s9  ;;  %v2925_v26 = vpack.i.bf16 %v689_v16, %v1176_v45  ;;  %v688_v61 = vsel %vm659_vm3, %v685_v0, %v687_v19  ;;  %v816_v49 = vsel %vm789_vm7, %v813_v20, %v815_v52  ;;  %v1078_v48 = vsel %vm1047_vm4, %v1075_v8, %v1077_v9 }
 0x1b5   :  { %v556_v31 = vsel %vm529_vm1, %v4464_v2, %v555_v58  ;;  %vm737_vm12 = vcmp.ge.s32.totalorder %v721_v23, 0  ;;  %v2900_v47 = vpack.i.bf16 %v816_v49, %v1304_v4  ;;  %v982_v58 = vadd.s32 1, %v3834_v60 }
 0x1b6   :  { %v2890_v6 = vpack.i.bf16 %v556_v31, %v1044_v10  ;;  %2926 = vrot.lane.b32.xlu0 %v2925_v26, %s2962_s9  ;;  %v785_v28 = vsel %vm737_vm12, %v688_v61, 0.0  ;;  %v4465_v18 = vrot.slane %v3097_v44, 1  ;;  %v1242_v19 = vadd.s32 3, %v3834_v60 }
 0x1b7   :  { %v2910_v57 = vpack.i.bf16 %v785_v28, %v1078_v48  ;;  %vm1014_vm3 = vcmp.lt.s32.totalorder %v982_v58, 16  ;;  %v4466_v20 = vrot.slane %v3485_v30, 5  ;;  %v4467_v9 = vrot.slane %v3097_v44, 3 }
 0x1b8   :  { %2891 = vrot.lane.b32.xlu1 %v2890_v6, %s2963_s10  ;;  %v966_v0 = vsel %vm4457_vm5, %v947_v24, %v4465_v18  ;;  %vm1274_vm4 = vcmp.lt.s32.totalorder %v1242_v19, 16  ;;  %v4468_v24 = vrot.slane %v3485_v30, 7  ;;  %v451_v45 = vadd.s32 4294967292, %v3292_v22 }
 0x1b9   :  { %v559_v52 = vsel %vm529_vm1, %v557_v39, %v4466_v20  ;;  %v1046_v53 = vsel %vm1014_vm3, %v966_v0, 0.0  ;;  %v1226_v15 = vsel %vm1177_vm11, %v1207_v14, %v4467_v9  ;;  %v3978_v39 = vpop.permute.xlu0 %2711  ;;  %v405_v14 = vrot.slane %v3116_v55, 4 }
 0x1ba   :  { %v2915_v8 = vpack.i.bf16 %v559_v52, %v1046_v53  ;;  %v819_v37 = vsel %vm789_vm7, %v817_v3, %v4468_v24  ;;  %v1306_v34 = vsel %vm1274_vm4, %v1226_v15, 0.0  ;;  %v407_v3 = vrot.slane %v3374_v63, 4 }
 0x1bb   :  { %v2930_v10 = vpack.i.bf16 %v819_v37, %v1306_v34  ;;  %v4469_v4 = vrot.slane %v3118_v56, 4  ;;  %vm4470_vm1 = vcmask 1043456   ;;  %vm467_vm11 = vcmp.ge.s32.totalorder %v451_v45, 0 }
 0x1bc   :  { %2901 = vrot.lane.b32.xlu1 %v2900_v47, %s2961_s28  ;;  %vm4471_vm7 = vmmov %vm4470_vm1 }
 0x1bd   :  { %v3980_v33 = vpop.permute.xlu0 %2716  ;;  %v3990_v61 = vsel %vm4470_vm1, %v4469_v4, %v405_v14  ;;  %v3999_v22 = vsel %vm4471_vm7, %v405_v14, %v407_v3  ;;  %v400_v4 = vrot.slane %v3097_v44, 4  ;;  %vm4472_vm9 = vmmov %vm4470_vm1 }
 0x1be   :  { %vm4474_vm8 = vmmov %vm4470_vm1 }
 0x1bf   :  { %vm4476_vm14 = vmmov %vm4470_vm1 }
 0x1c0   :  { %2911 = vrot.lane.b32.xlu1 %v2910_v57, %s2962_s9  ;;  %vm4477_vm12 = vmmov %vm4470_vm1 }
 0x1c1   :  { %v3982_v16 = vpop.permute.xlu0 %2721  ;;  %vm4478_vm3 = vmmov %vm4470_vm1 }
 0x1c2   :  { %vm4479_vm4 = vmmov %vm4470_vm1 }
 0x1c3   :  { %vm4481_vm7 = vmmov %vm4470_vm1 }
 0x1c4   :  { %2916 = vrot.lane.b32.xlu1 %v2915_v8, %s2963_s10  ;;  %v515_v8 = vsel %vm467_vm11, %v3999_v22, 0.0 }
 0x1c8   :  { %2931 = vrot.lane.b32.xlu1 %v2930_v10, %s2961_s28 }
 0x1db   :  { %v2727_v13 = vpop.permute.xlu1 %2726  ;;  %v2732_v23 = vpop.permute.xlu0 %2731 }
 0x1dc   :  { %v2729_v2 = vunpack.i.h.bf16 %v2727_v13  ;;  %v2728_v31 = vunpack.i.l.bf16 %v2727_v13  ;;  %v2734_v6 = vunpack.i.h.bf16 %v2732_v23  ;;  %v2733_v26 = vunpack.i.l.bf16 %v2732_v23 }
 0x1de   :  { %v1824_v49 = vsel %vm1771_vm10, %v3116_v55, %v2728_v31  ;;  %v1775_v47 = vsel %vm1771_vm10, %v3990_v61, %v2729_v2 }
 0x1df   :  { %v2737_v58 = vpop.permute.xlu1 %2736  ;;  %v2742_v28 = vpop.permute.xlu0 %2741  ;;  %v1840_v0 = vsel %vm46_vm0, %v1824_v49, %v2733_v26  ;;  %v1791_v19 = vsel %vm46_vm0, %v1775_v47, %v2734_v6  ;;  %v397_v6 = vrot.slane %v3485_v30, 4  ;;  %v447_v26 = vadd.s32 4294967292, %v3312_v54 }
 0x1e0   :  { %v2739_v48 = vunpack.i.h.bf16 %v2737_v58  ;;  %v2738_v57 = vunpack.i.l.bf16 %v2737_v58  ;;  %v2744_v56 = vunpack.i.h.bf16 %v2742_v28  ;;  %v2743_v18 = vunpack.i.l.bf16 %v2742_v28 }
 0x1e1   :  { %vm463_vm6 = vcmp.ge.s32.totalorder %v447_v26, 0  ;;  %v2718_v54 = vunpack.i.l.bf16 %v3980_v33  ;;  %v2724_v26 = vunpack.i.h.bf16 %v3982_v16 }
 0x1e2   :  { %v1856_v55 = vsel %vm1804_vm2, %v1840_v0, %v2738_v57  ;;  %v1808_v20 = vsel %vm1804_vm2, %v1791_v19, %v2739_v48  ;;  %v1825_v34 = vsel %vm1771_vm10, %v3374_v63, %v2743_v18  ;;  %v1776_v10 = vsel %vm1771_vm10, %v515_v8, %v2744_v56 }
 0x1e3   :  { %v2747_v52 = vpop.permute.xlu1 %2746  ;;  %v2752_v53 = vpop.permute.xlu0 %2751  ;;  %2039 = vmatprep.mubr.f32.mxu1 %v1856_v55  ;;  %v4023_v48 = vsel %vm4472_vm9, %v397_v6, %v400_v4  ;;  %v2713_v18 = vunpack.i.l.bf16 %v3978_v39  ;;  %v2723_v0 = vunpack.i.l.bf16 %v3982_v16 }
 0x1e4   :  { %v2749_v9 = vunpack.i.h.bf16 %v2747_v52  ;;  %v2748_v15 = vunpack.i.l.bf16 %v2747_v52  ;;  %v2754_v24 = vunpack.i.h.bf16 %v2752_v53  ;;  %v2753_v37 = vunpack.i.l.bf16 %v2752_v53  ;;  %2040 = vmatmul.mubr.f32.gmra.mrb[2].mxu1 %v1808_v20  ;;  %v1903_v52 = vld [vmem:[%s4394_s3 + $0x110] sm:$0xff]  ;;  %v1904_v53 = vld [vmem:[%s4394_s3 + $0x118] sm:$0xff] }
 0x1e5   :  { %v511_v19 = vsel %vm463_vm6, %v4023_v48, 0.0 }
 0x1e6   :  { %v1841_v14 = vsel %vm46_vm0, %v1825_v34, %v2748_v15  ;;  %v1792_v13 = vsel %vm46_vm0, %v1776_v10, %v2749_v9  ;;  %v2719_v34 = vunpack.i.h.bf16 %v3980_v33 }
 0x1e7   :  { %v4011_v23 = vpop.permute.xlu1 %2766  ;;  %v2757_v2 = vpop.permute.xlu0 %2756  ;;  %v1857_v31 = vsel %vm1804_vm2, %v1841_v14, %v2753_v37  ;;  %v1809_v45 = vsel %vm1804_vm2, %v1792_v13, %v2754_v24  ;;  %v2714_v37 = vunpack.i.h.bf16 %v3978_v39 }
 0x1e8   :  { %2044 = vmatprep.mubr.f32.mxu1 %v1857_v31  ;;  %v2759_v58 = vunpack.i.h.bf16 %v2757_v2  ;;  %v2758_v28 = vunpack.i.l.bf16 %v2757_v2  ;;  %v1822_v31 = vsel %vm1771_vm10, %v3087_v40, %v2713_v18 }
 0x1e9   :  { %2045 = vmatmul.mubr.f32.gmra.mrb[4].mxu1 %v1809_v45  ;;  %v2668_v45 = vpack.c.bf16 %v1904_v53, %v1903_v52  ;;  %v1838_v39 = vsel %vm46_vm0, %v1822_v31, %v2718_v54 }
 0x1ea   :  { %v1772_v8 = vsel %vm1771_vm10, %v511_v19, %v2759_v58  ;;  %v1821_v24 = vsel %vm1771_vm10, %v3097_v44, %v2758_v28  ;;  %v1854_v33 = vsel %vm1804_vm2, %v1838_v39, %v2723_v0  ;;  %v4473_v58 = vrot.slane %v3087_v40, 4 }
 0x1eb   :  { %v4018_v49 = vpop.permute.xlu1 %2776  ;;  %v1310_v0 = vadd.s32 4, %v3290_v12  ;;  %v411_v19 = vrot.slane %v3453_v17, 4  ;;  %v409_v12 = vrot.slane %v3317_v43, 4 }
 0x1ec   :  { %v2762_v47 = vpop.permute.xlu0 %2761  ;;  %v402_v28 = vsel %vm4474_vm8, %v400_v4, %v4473_v58  ;;  %vm4482_vm8 = vmmov %vm4470_vm1 }
 0x1ed   :  { %v2764_v57 = vunpack.i.h.bf16 %v2762_v47  ;;  %v2763_v56 = vunpack.i.l.bf16 %v2762_v47  ;;  %vm1342_vm13 = vcmp.lt.s32.totalorder %v1310_v0, 16 }
 0x1ef   :  { %v1788_v10 = vsel %vm46_vm0, %v1772_v8, %v2764_v57  ;;  %v1837_v14 = vsel %vm46_vm0, %v1821_v24, %v2763_v56  ;;  %v1773_v57 = vsel %vm1771_vm10, %v402_v28, %v2714_v37  ;;  %v413_v24 = vrot.slane %v3413_v38, 4 }
 0x1f0   :  { %v4029_v55 = vpop.permute.xlu1 %2781  ;;  %v1789_v16 = vsel %vm46_vm0, %v1773_v57, %v2719_v34  ;;  %v1316_v37 = vadd.s32 4, %v3661_v11  ;;  %v417_v34 = vrot.slane %v3406_v25, 4 }
 0x1f1   :  { %v2772_v20 = vpop.permute.xlu0 %2771  ;;  %v1806_v54 = vsel %vm1804_vm2, %v1789_v16, %v2724_v26  ;;  %v4100_v39 = vsel %vm4478_vm3, %v411_v19, %v413_v24  ;;  %v4480_v16 = vld [vmem:[#allocation6_spill] sm:$0xff]  ;;  %vm4485_vm3 = vmmov %vm4470_vm1 }
 0x1f2   :  { %v2774_v9 = vunpack.i.h.bf16 %v2772_v20  ;;  %v2773_v15 = vunpack.i.l.bf16 %v2772_v20  ;;  %v4475_v20 = vld [vmem:[#allocation5_spill] sm:$0xff]  ;;  %vm1348_vm11 = vcmp.lt.s32.totalorder %v1316_v37, 16 }
 0x1f3   :  { %v1314_v52 = vadd.s32 4, %v4475_v20  ;;  %v1318_v20 = vadd.s32 4, %v3442_v50  ;;  %v1320_v50 = vadd.s32 4, %v3801_v36 }
 0x1f4   :  { %v1853_v13 = vsel %vm1804_vm2, %v1837_v14, %v2773_v15  ;;  %v1805_v2 = vsel %vm1804_vm2, %v1788_v10, %v2774_v9  ;;  %v1374_v9 = vsel %vm1342_vm13, %v3999_v22, 0.0 }
 0x1f5   :  { %v4051_v44 = vpop.permute.xlu0 %2796  ;;  %2024 = vmatprep.mubr.f32.mxu0 %v1853_v13  ;;  %vm1346_vm5 = vcmp.lt.s32.totalorder %v1314_v52, 16  ;;  %v423_v52 = vrot.slane %v3384_v7, 4  ;;  %vm1350_vm13 = vcmp.lt.s32.totalorder %v1318_v20, 16  ;;  %v2779_v20 = vunpack.i.h.bf16 %v4018_v49 }
 0x1f6   :  { %v4049_v47 = vpop.permute.xlu1 %2786  ;;  %2025 = vmatmul.mubr.f32.vlgmr.msra.gmra.mrb[4].mxu0 %v1805_v2 }
 0x1f7   :  { %2029 = vmatprep.mubr.f32.mxu0 %v1854_v33  ;;  %2667 = vmatpush3.bf16.msra.mxu0 %v3868_v1  ;;  %v1312_v1 = vadd.s32 4, %v3411_v42  ;;  %v410_v42 = vsel %vm4476_vm14, %v407_v3, %v409_v12  ;;  %v415_v3 = vrot.slane %v3320_v46, 4  ;;  %vm4483_vm14 = vmmov %vm4470_vm1 }
 0x1f8   :  { %2669 = vmatprep.subr.bf16.mxu0 %v2668_v45 }
 0x1f9   :  { %vm1344_vm15 = vcmp.lt.s32.totalorder %v1312_v1, 16 }
 0x1fa   :  { %2030 = vmatmul.mubr.f32.gmra.mrb[6].mxu0 %v1806_v54  ;;  %v453_v54 = vadd.s32 4294967292, %v3430_v27 }
 0x1fb   :  { %v4061_v56 = vpop.permute.xlu1 %2791  ;;  %2671 = vmatpush3.bf16.msra.mxu0 %v2668_v45  ;;  %2592 = vmatprep.mubr.msk.f32.mxu0 %vm1771_vm10, %v402_v28  ;;  %v419_v45 = vrot.slane %v3491_v5, 4 }
 0x1fc   :  { %v2812_v18 = vpop.permute.xlu0 %2811  ;;  %vm469_vm9 = vcmp.ge.s32.totalorder %v453_v54, 0  ;;  %v2793_v54 = vunpack.i.l.bf16 %v4061_v56 }
 0x1fd   :  { %v2814_v10 = vunpack.i.h.bf16 %v2812_v18  ;;  %v2813_v14 = vunpack.i.l.bf16 %v2812_v18  ;;  %v4112_v18 = vadd.s32 4294967292, %v4480_v16  ;;  %v4128_v27 = vsel %vm4481_vm7, %v417_v34, %v419_v45 }
 0x1fe   :  { %2593 = vmatmul.mubr.msk.f32.vlgmr.msra.gmra.mrb[8].mxu0 %vm1771_vm10, %v3254_v59 }
 0x1ff   :  { %v4066_v40 = vpop.permute.xlu1 %2801  ;;  %2595 = vmatprep.mubr.msk.f32.mxu0 %vm1771_vm10, %v3990_v61  ;;  %v412_v61 = vsel %vm4477_vm12, %v409_v12, %v411_v19  ;;  %v421_v12 = vrot.slane %v3527_v29, 4  ;;  %vm471_vm6 = vcmp.ge.s32.totalorder %v4112_v18, 0  ;;  %vm1352_vm12 = vcmp.lt.s32.totalorder %v1320_v50, 16 }
 0x200   :  { %v4068_v4 = vpop.permute.xlu0 %2821  ;;  %v1376_v31 = vsel %vm1344_vm15, %v412_v61, 0.0 }
 0x201   :  { %v2824_v37 = vunpack.i.h.bf16 %v4068_v4  ;;  %v4150_v36 = vsel %vm4483_vm14, %v419_v45, %v421_v12  ;;  %v2769_v45 = vunpack.i.h.bf16 %v4011_v23 }
 0x202   :  { %2596 = vmatmul.mubr.msk.f32.gmra.mrb[10].mxu0 %vm1771_vm10, %v1374_v9  ;;  %v4131_v9 = vadd.s32 4, %v3834_v60  ;;  %v4142_v60 = vsel %vm4482_vm8, %v421_v12, %v423_v52 }
 0x203   :  { %2598 = vmatprep.mubr.msk.f32.mxu0 %vm1771_vm10, %v410_v42 }
 0x204   :  { %v4078_v8 = vpop.permute.xlu0 %2826  ;;  %vm1354_vm15 = vcmp.lt.s32.totalorder %v4131_v9, 16 }
 0x205   :  { %v2807_v53 = vpop.permute.xlu1 %2806 }
 0x206   :  { %v2809_v59 = vunpack.i.h.bf16 %v2807_v53  ;;  %v2808_v15 = vunpack.i.l.bf16 %v2807_v53  ;;  %2599 = vmatmul.mubr.msk.f32.gmra.mrb[12].mxu0 %vm1771_vm10, %v1376_v31  ;;  %v4125_v53 = vsel %vm4470_vm1, %v415_v3, %v417_v34 }
 0x207   :  { %2601 = vmatprep.mubr.msk.f32.mxu0 %vm1771_vm10, %v4100_v39 }
 0x208   :  { %v1777_v22 = vsel %vm1771_vm10, %v410_v42, %v2809_v59  ;;  %v1826_v63 = vsel %vm1771_vm10, %v3317_v43, %v2808_v15  ;;  %v4094_v2 = vpop.permute.xlu0 %2836  ;;  %v4103_v43 = vsel %vm4479_vm4, %v413_v24, %v415_v3  ;;  %v425_v42 = vrot.slane %v3444_v62, 4  ;;  %vm4486_vm4 = vmmov %vm4470_vm1 }
 0x209   :  { %v2817_v13 = vpop.permute.xlu1 %2816  ;;  %v1842_v33 = vsel %vm46_vm0, %v1826_v63, %v2813_v14  ;;  %v1793_v58 = vsel %vm46_vm0, %v1777_v22, %v2814_v10  ;;  %v1378_v19 = vsel %vm1346_vm5, %v4103_v43, 0.0  ;;  %v427_v59 = vrot.slane %v3535_v35, 4  ;;  %vm4484_vm5 = vmmov %vm4470_vm1 }
 0x20a   :  { %v2819_v26 = vunpack.i.h.bf16 %v2817_v13  ;;  %v2818_v11 = vunpack.i.l.bf16 %v2817_v13  ;;  %2602 = vmatmul.mubr.msk.f32.gmra.mrb[14].mxu0 %vm1771_vm10, %v1378_v19  ;;  %v1380_v24 = vsel %vm1348_vm11, %v4128_v27, 0.0  ;;  %v2823_v22 = vunpack.i.l.bf16 %v4068_v4 }
 0x20b   :  { %2604 = vmatprep.mubr.msk.f32.mxu0 %vm1771_vm10, %v4125_v53  ;;  %v2768_v3 = vunpack.i.l.bf16 %v4011_v23  ;;  %v517_v14 = vsel %vm469_vm9, %v412_v61, 0.0  ;;  %v1382_v4 = vsel %vm1350_vm13, %v4142_v60, 0.0  ;;  %v4159_v13 = vsel %vm4484_vm5, %v423_v52, %v425_v42 }
 0x20c   :  { %v1858_v28 = vsel %vm1804_vm2, %v1842_v33, %v2818_v11  ;;  %v1810_v57 = vsel %vm1804_vm2, %v1793_v58, %v2819_v26  ;;  %v4117_v1 = vpop.permute.xlu0 %2856  ;;  %v4162_v31 = vsel %vm4485_vm3, %v425_v42, %v427_v59  ;;  %v2778_v26 = vunpack.i.l.bf16 %v4018_v49 }
 0x20d   :  { %v4115_v0 = vpop.permute.xlu1 %2831  ;;  %2049 = vmatprep.mubr.f32.mxu1 %v1858_v28  ;;  %v2783_v11 = vunpack.i.l.bf16 %v4029_v55  ;;  %v2788_v33 = vunpack.i.l.bf16 %v4049_v47  ;;  %v1827_v61 = vsel %vm1771_vm10, %v3453_v17, %v2823_v22  ;;  %v1778_v16 = vsel %vm1771_vm10, %v517_v14, %v2824_v37 }
 0x20e   :  { %2050 = vmatmul.mubr.f32.gmra.mrb[6].mxu1 %v1810_v57  ;;  %2605 = vmatmul.mubr.msk.f32.gmra.mrb[16].mxu0 %vm1771_vm10, %v1380_v24  ;;  %v1828_v12 = vsel %vm1771_vm10, %v3413_v38, %v2768_v3  ;;  %v2789_v52 = vunpack.i.h.bf16 %v4049_v47  ;;  %v2784_v24 = vunpack.i.h.bf16 %v4029_v55  ;;  %v2794_v37 = vunpack.i.h.bf16 %v4061_v56 }
 0x20f   :  { %2607 = vmatprep.mubr.msk.f32.mxu0 %vm1771_vm10, %v4150_v36  ;;  %v1844_v38 = vsel %vm46_vm0, %v1828_v12, %v2778_v26  ;;  %v4195_v3 = vsel %vm4486_vm4, %v427_v59, %v397_v6  ;;  %v1829_v55 = vsel %vm1771_vm10, %v3320_v46, %v2788_v33  ;;  %v1779_v56 = vsel %vm1771_vm10, %v4100_v39, %v2769_v45 }
 0x210   :  { %v4146_v63 = vpop.permute.xlu0 %2866  ;;  %v1860_v47 = vsel %vm1804_vm2, %v1844_v38, %v2783_v11  ;;  %v519_v50 = vsel %vm471_vm6, %v4103_v43, 0.0  ;;  %v2798_v14 = vunpack.i.l.bf16 %v4051_v44  ;;  %v457_v6 = vadd.s32 4294967292, %v3692_v21 }
 0x211   :  { %v2842_v15 = vpop.permute.xlu1 %2841  ;;  %v1795_v59 = vsel %vm46_vm0, %v1779_v56, %v2779_v20  ;;  %v1780_v46 = vsel %vm1771_vm10, %v519_v50, %v2789_v52  ;;  %v1386_v43 = vsel %vm1354_vm15, %v4023_v48, 0.0  ;;  %v2799_v26 = vunpack.i.h.bf16 %v4051_v44 }
 0x212   :  { %v2844_v34 = vunpack.i.h.bf16 %v2842_v15  ;;  %v2843_v10 = vunpack.i.l.bf16 %v2842_v15  ;;  %2608 = vmatmul.mubr.msk.f32.gmra.mrb[18].mxu0 %vm1771_vm10, %v1382_v4  ;;  %v1812_v45 = vsel %vm1804_vm2, %v1795_v59, %v2784_v24  ;;  %v1796_v18 = vsel %vm46_vm0, %v1780_v46, %v2794_v37 }
 0x213   :  { %2610 = vmatprep.mubr.msk.f32.mxu0 %vm1771_vm10, %v4159_v13  ;;  %v2868_v9 = vunpack.i.l.bf16 %v4146_v63  ;;  %vm473_vm1 = vcmp.ge.s32.totalorder %v457_v6, 0  ;;  %v1813_v48 = vsel %vm1804_vm2, %v1796_v18, %v2799_v26  ;;  %v2869_v44 = vunpack.i.h.bf16 %v4146_v63 }
 0x214   :  { %v1843_v23 = vsel %vm46_vm0, %v1827_v61, %v2843_v10  ;;  %v1794_v19 = vsel %vm46_vm0, %v1778_v16, %v2844_v34  ;;  %v4181_v42 = vpop.permute.xlu0 %2881  ;;  %v1384_v34 = vsel %vm1352_vm12, %v4162_v31, 0.0  ;;  %v1845_v10 = vsel %vm46_vm0, %v1829_v55, %v2793_v54 }
 0x215   :  { %v2847_v58 = vpop.permute.xlu1 %2846  ;;  %v1861_v21 = vsel %vm1804_vm2, %v1845_v10, %v2798_v14  ;;  %v2883_v20 = vunpack.i.l.bf16 %v4181_v42  ;;  %v459_v52 = vadd.s32 4294967292, %v3507_v51  ;;  %v1831_v63 = vsel %vm1771_vm10, %v3491_v5, %v2868_v9 }
 0x216   :  { %v2849_v28 = vunpack.i.h.bf16 %v2847_v58  ;;  %v2848_v57 = vunpack.i.l.bf16 %v2847_v58  ;;  %2611 = vmatmul.mubr.msk.f32.gmra.mrb[20].mxu0 %vm1771_vm10, %v1384_v34  ;;  %v2828_v37 = vunpack.i.l.bf16 %v4078_v8  ;;  %v2838_v38 = vunpack.i.l.bf16 %v4094_v2 }
 0x217   :  { %2613 = vmatprep.mubr.msk.f32.mxu0 %vm1771_vm10, %v4195_v3  ;;  %v2884_v55 = vunpack.i.h.bf16 %v4181_v42  ;;  %v2829_v50 = vunpack.i.h.bf16 %v4078_v8  ;;  %vm475_vm7 = vcmp.ge.s32.totalorder %v459_v52, 0  ;;  %v2839_v14 = vunpack.i.h.bf16 %v4094_v2 }
 0x218   :  { %v1859_v17 = vsel %vm1804_vm2, %v1843_v23, %v2848_v57  ;;  %v1811_v15 = vsel %vm1804_vm2, %v1794_v19, %v2849_v28  ;;  %v4217_v11 = vpop.permute.xlu0 %2886  ;;  %v2858_v28 = vunpack.i.l.bf16 %v4117_v1  ;;  %v2859_v23 = vunpack.i.h.bf16 %v4117_v1 }
 0x219   :  { %v2852_v22 = vpop.permute.xlu1 %2851  ;;  %2054 = vmatprep.mubr.f32.mxu1 %v1859_v17  ;;  %v2803_v17 = vunpack.i.l.bf16 %v4066_v40  ;;  %v2834_v6 = vunpack.i.h.bf16 %v4115_v0  ;;  %v1833_v8 = vsel %vm1771_vm10, %v3384_v7, %v2838_v38  ;;  %v461_v18 = vadd.s32 4294967292, %v3820_v32 }
 0x21a   :  { %v2853_v49 = vunpack.i.l.bf16 %v2852_v22  ;;  %2055 = vmatmul.mubr.f32.gmra.mrb[8].mxu1 %v1811_v15  ;;  %v2854_v4 = vunpack.i.h.bf16 %v2852_v22  ;;  %2614 = vmatmul.mubr.msk.f32.gmra.mrb[22].mxu0 %vm1771_vm10, %v1386_v43  ;;  %v2888_v43 = vunpack.i.l.bf16 %v4217_v11 }
 0x21b   :  { %2059 = vmatprep.mubr.f32.mxu1 %v1860_v47  ;;  %v2804_v47 = vunpack.i.h.bf16 %v4066_v40  ;;  %v1832_v10 = vsel %vm1771_vm10, %v3527_v29, %v2803_v17  ;;  %vm477_vm11 = vcmp.ge.s32.totalorder %v461_v18, 0 }
 0x21c   :  { %v1830_v58 = vsel %vm1771_vm10, %v3406_v25, %v2853_v49  ;;  %v1781_v54 = vsel %vm1771_vm10, %v4125_v53, %v2854_v4  ;;  %v521_v53 = vsel %vm473_vm1, %v4128_v27, 0.0  ;;  %v4239_v15 = vpop.permute.xlu0 %2896  ;;  %v2833_v49 = vunpack.i.l.bf16 %v4115_v0 }
 0x21d   :  { %v1846_v16 = vsel %vm46_vm0, %v1830_v58, %v2858_v28  ;;  %v1797_v1 = vsel %vm46_vm0, %v1781_v54, %v2859_v23  ;;  %v1782_v5 = vsel %vm1771_vm10, %v521_v53, %v2869_v44  ;;  %v1848_v4 = vsel %vm46_vm0, %v1832_v10, %v2828_v37 }
 0x21e   :  { %v2862_v39 = vpop.permute.xlu1 %2861  ;;  %2060 = vmatmul.mubr.f32.gmra.mrb[10].mxu1 %v1812_v45  ;;  %v1864_v45 = vsel %vm1804_vm2, %v1848_v4, %v2833_v49  ;;  %v1783_v29 = vsel %vm1771_vm10, %v4150_v36, %v2804_v47  ;;  %v523_v0 = vsel %vm475_vm7, %v4142_v60, 0.0  ;;  %v2898_v32 = vunpack.i.l.bf16 %v4239_v15 }
 0x21f   :  { %v2863_v33 = vunpack.i.l.bf16 %v2862_v39  ;;  %2064 = vmatprep.mubr.f32.mxu1 %v1861_v21  ;;  %v2864_v57 = vunpack.i.h.bf16 %v2862_v39  ;;  %v1799_v26 = vsel %vm46_vm0, %v1783_v29, %v2829_v50  ;;  %v1784_v7 = vsel %vm1771_vm10, %v523_v0, %v2839_v14 }
 0x220   :  { %v2907_v40 = vpop.permute.xlu0 %2906  ;;  %v1816_v58 = vsel %vm1804_vm2, %v1799_v26, %v2834_v6  ;;  %v525_v17 = vsel %vm477_vm11, %v4162_v31, 0.0 }
 0x221   :  { %v1862_v12 = vsel %vm1804_vm2, %v1846_v16, %v2863_v33  ;;  %v1814_v51 = vsel %vm1804_vm2, %v1797_v1, %v2864_v57  ;;  %v2908_v44 = vunpack.i.l.bf16 %v2907_v40  ;;  %v2909_v57 = vunpack.i.h.bf16 %v2907_v40 }
 0x222   :  { %v2872_v61 = vpop.permute.xlu1 %2871  ;;  %2065 = vmatmul.mubr.f32.gmra.mrb[12].mxu1 %v1813_v48  ;;  %v2889_v48 = vunpack.i.h.bf16 %v4217_v11 }
 0x223   :  { %v2874_v25 = vunpack.i.h.bf16 %v2872_v61  ;;  %v2873_v19 = vunpack.i.l.bf16 %v2872_v61  ;;  %2069 = vmatprep.mubr.f32.mxu1 %v1862_v12  ;;  %v1786_v37 = vsel %vm1771_vm10, %v525_v17, %v2909_v57 }
 0x224   :  { %v2922_v61 = vpop.permute.xlu0 %2921 }
 0x225   :  { %v1847_v24 = vsel %vm46_vm0, %v1831_v63, %v2873_v19  ;;  %v1798_v27 = vsel %vm46_vm0, %v1782_v5, %v2874_v25  ;;  %v2923_v52 = vunpack.i.l.bf16 %v2922_v61  ;;  %v1835_v63 = vsel %vm1771_vm10, %v3535_v35, %v2908_v44 }
 0x226   :  { %v2877_v22 = vpop.permute.xlu1 %2876  ;;  %v1863_v34 = vsel %vm1804_vm2, %v1847_v24, %v2883_v20  ;;  %2070 = vmatmul.mubr.f32.gmra.mrb[14].mxu1 %v1814_v51  ;;  %v1815_v46 = vsel %vm1804_vm2, %v1798_v27, %v2884_v55  ;;  %v2924_v5 = vunpack.i.h.bf16 %v2922_v61 }
 0x227   :  { %v2878_v56 = vunpack.i.l.bf16 %v2877_v22  ;;  %2074 = vmatprep.mubr.f32.mxu1 %v1863_v34  ;;  %v2879_v39 = vunpack.i.h.bf16 %v2877_v22 }
 0x228   :  { %v2927_v22 = vpop.permute.xlu0 %2926 }
 0x229   :  { %v1849_v2 = vsel %vm46_vm0, %v1833_v8, %v2878_v56  ;;  %v1800_v9 = vsel %vm46_vm0, %v1784_v7, %v2879_v39  ;;  %v2929_v49 = vunpack.i.h.bf16 %v2927_v22  ;;  %v2928_v27 = vunpack.i.l.bf16 %v2927_v22 }
 0x22a   :  { %v2892_v59 = vpop.permute.xlu1 %2891  ;;  %2075 = vmatmul.mubr.f32.gmra.mrb[16].mxu1 %v1815_v46  ;;  %v1865_v36 = vsel %vm1804_vm2, %v1849_v2, %v2888_v43  ;;  %v1817_v23 = vsel %vm1804_vm2, %v1800_v9, %v2889_v48 }
 0x22b   :  { %v2893_v42 = vunpack.i.l.bf16 %v2892_v59  ;;  %2079 = vmatprep.mubr.f32.mxu1 %v1864_v45  ;;  %v2894_v33 = vunpack.i.h.bf16 %v2892_v59 }
 0x22d   :  { %v1834_v60 = vsel %vm1771_vm10, %v3444_v62, %v2893_v42  ;;  %v1785_v19 = vsel %vm1771_vm10, %v4159_v13, %v2894_v33  ;;  %v2899_v62 = vunpack.i.h.bf16 %v4239_v15  ;;  %v4306_v33 = vld [vmem:[%s4395_s4] ss:$0 sm:$0xff]  ;;  %s2964_s4 = smov 8  }
 0x22e   :  { %v2902_v21 = vpop.permute.xlu1 %2901  ;;  %2080 = vmatmul.mubr.f32.gmra.mrb[18].mxu1 %v1816_v58  ;;  %v1850_v25 = vsel %vm46_vm0, %v1834_v60, %v2898_v32 }
 0x22f   :  { %v2903_v28 = vunpack.i.l.bf16 %v2902_v21  ;;  %2084 = vmatprep.mubr.f32.mxu1 %v1865_v36  ;;  %v2904_v16 = vunpack.i.h.bf16 %v2902_v21  ;;  %v1801_v53 = vsel %vm46_vm0, %v1785_v19, %v2899_v62 }
 0x231   :  { %v1866_v20 = vsel %vm1804_vm2, %v1850_v25, %v2903_v28  ;;  %v1818_v15 = vsel %vm1804_vm2, %v1801_v53, %v2904_v16 }
 0x232   :  { %v2912_v54 = vpop.permute.xlu1 %2911  ;;  %2085 = vmatmul.mubr.f32.gmra.mrb[20].mxu1 %v1817_v23 }
 0x233   :  { %v2914_v12 = vunpack.i.h.bf16 %v2912_v54  ;;  %v2913_v11 = vunpack.i.l.bf16 %v2912_v54  ;;  %2089 = vmatprep.mubr.f32.mxu1 %v1866_v20 }
 0x235   :  { %v1851_v1 = vsel %vm46_vm0, %v1835_v63, %v2913_v11  ;;  %v1802_v35 = vsel %vm46_vm0, %v1786_v37, %v2914_v12 }
 0x236   :  { %v2917_v13 = vpop.permute.xlu1 %2916  ;;  %v1867_v24 = vsel %vm1804_vm2, %v1851_v1, %v2923_v52  ;;  %2090 = vmatmul.mubr.f32.gmra.mrb[22].mxu1 %v1818_v15  ;;  %v1819_v55 = vsel %vm1804_vm2, %v1802_v35, %v2924_v5 }
 0x237   :  { %v2919_v51 = vunpack.i.h.bf16 %v2917_v13  ;;  %v2918_v34 = vunpack.i.l.bf16 %v2917_v13  ;;  %2094 = vmatprep.mubr.f32.mxu1 %v1867_v24 }
 0x239   :  { %v1836_v31 = vsel %vm1771_vm10, %v3485_v30, %v2918_v34  ;;  %v1787_v38 = vsel %vm1771_vm10, %v4195_v3, %v2919_v51 }
 0x23a   :  { %v2932_v47 = vpop.permute.xlu1 %2931  ;;  %2095 = vmatmul.mubr.f32.gmra.mrb[24].mxu1 %v1819_v55  ;;  %v1852_v10 = vsel %vm46_vm0, %v1836_v31, %v2928_v27  ;;  %v1803_v14 = vsel %vm46_vm0, %v1787_v38, %v2929_v49 }
 0x23b   :  { %v2934_v56 = vunpack.i.h.bf16 %v2932_v47  ;;  %v2933_v50 = vunpack.i.l.bf16 %v2932_v47 }
 0x23d   :  { %v1868_v6 = vsel %vm1804_vm2, %v1852_v10, %v2933_v50  ;;  %v1820_v59 = vsel %vm1804_vm2, %v1803_v14, %v2934_v56 }
 0x23e   :  { %2099 = vmatprep.mubr.f32.mxu1 %v1868_v6 }
 0x23f   :  { %2100 = vmatmul.mubr.f32.gmra.mrb[26].mxu1 %v1820_v59 }
 0x253   :  { %v2500_v30 = vpop.f32.mrb[0].mxu1 }
 0x254   :  { %v2501_v3 = vpop.f32.mrb[1].mxu1 }
 0x255   :  { %v2502_v46 = vadd.f32 %v2501_v3, %v2500_v30 }
 0x257   :  { %v2037_v32 = vadd.f32 %v2502_v46, %v4306_v33 }
 0x2b7   :  { %v2503_v4 = vpop.f32.mrb[2].mxu1 }
 0x2b8   :  { %v2504_v40 = vpop.f32.mrb[3].mxu1 }
 0x2b9   :  { %v2505_v39 = vadd.f32 %v2504_v40, %v2503_v4 }
 0x2bb   :  { %v2042_v60 = vadd.f32 %v2505_v39, %v4306_v33 }
 0x2bc   :  { %v2506_v42 = vpop.f32.mrb[4].mxu1 }
 0x2bd   :  { %v2507_v45 = vpop.f32.mrb[5].mxu1 }
 0x2be   :  { %v2508_v8 = vadd.f32 %v2507_v45, %v2506_v42 }
 0x2c0   :  { %v2047_v54 = vadd.f32 %v2508_v8, %v4306_v33 }
 0x2c9   :  { %v2494_v29 = vpop.f32.mrb[4].mxu0 }
 0x2ca   :  { %v2495_v2 = vpop.f32.mrb[5].mxu0 }
 0x2cb   :  { %v2496_v0 = vadd.f32 %v2495_v2, %v2494_v29 }
 0x2cd   :  { %v2497_v43 = vpop.f32.mrb[6].mxu0  ;;  %v2027_v7 = vadd.f32 %v2496_v0, %v4306_v33 }
 0x2ce   :  { %v2498_v18 = vpop.f32.mrb[7].mxu0 }
 0x2cf   :  { %v2499_v26 = vadd.f32 %v2498_v18, %v2497_v43 }
 0x2d1   :  { %v2032_v21 = vadd.f32 %v2499_v26, %v4306_v33  ;;  %v2594_v58 = vpop.f32.mrb[8].mxu0 }
 0x2d2   :  { %v2171_v28 = vpop.f32.mrb[9].mxu0 }
 0x2d3   :  { %v4310_v36 = vadd.f32 %v2594_v58, %v2032_v21  ;;  %v4312_v9 = vadd.f32 %v2171_v28, %v2027_v7 }
 0x2d5   :  { %v2597_v48 = vpop.f32.mrb[10].mxu0 }
 0x2d6   :  { %v4316_v44 = vadd.f32 %v2597_v48, %v2042_v60  ;;  %v2181_v57 = vpop.f32.mrb[11].mxu0 }
 0x2d7   :  { %v4318_v61 = vadd.f32 %v2181_v57, %v2037_v32 }
 0x2d9   :  { %v2600_v16 = vpop.f32.mrb[12].mxu0 }
 0x2da   :  { %v2191_v23 = vpop.f32.mrb[13].mxu0 }
 0x2db   :  { %v2192_v25 = vadd.f32 %v2191_v23, %v2047_v54 }
 0x2dd   :  { %v2254_v19 = vmax.f32 %v2192_v25, 0.0  ;;  %v2603_v12 = vpop.f32.mrb[14].mxu0 }
 0x2de   :  { %v2201_v20 = vpop.f32.mrb[15].mxu0 }
 0x2df   :  { %2270 = vrot.lane.b32.xlu0 %v2254_v19, %s2963_s10 }
 0x2e1   :  { %v2509_v62 = vpop.f32.mrb[6].mxu1  ;;  %v2606_v17 = vpop.f32.mrb[16].mxu0 }
 0x2e2   :  { %v2510_v11 = vpop.f32.mrb[7].mxu1  ;;  %v2211_v53 = vpop.f32.mrb[17].mxu0 }
 0x2e3   :  { %v2511_v52 = vadd.f32 %v2510_v11, %v2509_v62 }
 0x2e5   :  { %v2052_v63 = vadd.f32 %v2511_v52, %v4306_v33  ;;  %v2609_v13 = vpop.f32.mrb[18].mxu0 }
 0x2e6   :  { %v2221_v24 = vpop.f32.mrb[19].mxu0 }
 0x2e7   :  { %v2197_v1 = vadd.f32 %v2600_v16, %v2052_v63 }
 0x2e9   :  { %v2255_v15 = vmax.f32 %v2197_v1, 0.0  ;;  %v2612_v22 = vpop.f32.mrb[20].mxu0 }
 0x2ea   :  { %v2231_v34 = vpop.f32.mrb[21].mxu0 }
 0x2eb   :  { %2272 = vrot.lane.b32.xlu1 %v2255_v15, %s2963_s10 }
 0x2ed   :  { %v2512_v37 = vpop.f32.mrb[8].mxu1  ;;  %v4325_v38 = vpop.f32.mrb[22].mxu0 }
 0x2ee   :  { %v2513_v51 = vpop.f32.mrb[9].mxu1  ;;  %v2241_v27 = vpop.f32.mrb[23].mxu0 }
 0x2ef   :  { %v2514_v35 = vadd.f32 %v2513_v51, %v2512_v37 }
 0x2f1   :  { %v2057_v5 = vadd.f32 %v2514_v35, %v4306_v33  ;;  %v2515_v31 = vpop.f32.mrb[10].mxu1 }
 0x2f2   :  { %v2516_v49 = vpop.f32.mrb[11].mxu1 }
 0x2f3   :  { %v2517_v47 = vadd.f32 %v2516_v49, %v2515_v31  ;;  %v2202_v55 = vadd.f32 %v2201_v20, %v2057_v5 }
 0x2f5   :  { %v2062_v56 = vadd.f32 %v2517_v47, %v4306_v33  ;;  %v2518_v50 = vpop.f32.mrb[12].mxu1  ;;  %v2256_v45 = vmax.f32 %v2202_v55, 0.0 }
 0x2f6   :  { %v2519_v10 = vpop.f32.mrb[13].mxu1 }
 0x2f7   :  { %v2520_v14 = vadd.f32 %v2519_v10, %v2518_v50  ;;  %v2207_v6 = vadd.f32 %v2603_v12, %v2062_v56 }
 0x2f9   :  { %v2067_v59 = vadd.f32 %v2520_v14, %v4306_v33  ;;  %v2521_v30 = vpop.f32.mrb[14].mxu1  ;;  %v2257_v3 = vmax.f32 %v2207_v6, 0.0  ;;  %v2250_v6 = vmax.f32 %v4312_v9, 0.0 }
 0x2fa   :  { %v2522_v46 = vpop.f32.mrb[15].mxu1 }
 0x2fb   :  { %v2523_v4 = vadd.f32 %v2522_v46, %v2521_v30  ;;  %2276 = vrot.lane.b32.xlu0 %v2257_v3, %s2963_s10  ;;  %v2212_v40 = vadd.f32 %v2211_v53, %v2067_v59  ;;  %v2252_v59 = vmax.f32 %v4318_v61, 0.0 }
 0x2fd   :  { %v2072_v39 = vadd.f32 %v2523_v4, %v4306_v33  ;;  %v2524_v42 = vpop.f32.mrb[16].mxu1  ;;  %v2258_v26 = vmax.f32 %v2212_v40, 0.0 }
 0x2fe   :  { %v2525_v8 = vpop.f32.mrb[17].mxu1 }
 0x2ff   :  { %v2526_v29 = vadd.f32 %v2525_v8, %v2524_v42  ;;  %2274 = vrot.lane.b32.xlu0 %v2256_v45, %s2963_s10  ;;  %v2217_v2 = vadd.f32 %v2606_v17, %v2072_v39  ;;  %v2253_v42 = vmax.f32 %v4316_v44, 0.0 }
 0x301   :  { %v2077_v0 = vadd.f32 %v2526_v29, %v4306_v33  ;;  %v2527_v43 = vpop.f32.mrb[18].mxu1  ;;  %v2259_v18 = vmax.f32 %v2217_v2, 0.0 }
 0x302   :  { %v2528_v21 = vpop.f32.mrb[19].mxu1 }
 0x303   :  { %v2529_v58 = vadd.f32 %v2528_v21, %v2527_v43  ;;  %2288 = vrot.lane.b32.xlu1 %v2259_v18, %s2962_s9  ;;  %2286 = vrot.lane.b32.xlu0 %v2258_v26, %s2962_s9  ;;  %v2222_v7 = vadd.f32 %v2221_v24, %v2077_v0 }
 0x305   :  { %v2082_v28 = vadd.f32 %v2529_v58, %v4306_v33  ;;  %v2530_v60 = vpop.f32.mrb[20].mxu1  ;;  %v2260_v48 = vmax.f32 %v2222_v7, 0.0 }
 0x306   :  { %v2531_v32 = vpop.f32.mrb[21].mxu1 }
 0x307   :  { %v2532_v57 = vadd.f32 %v2531_v32, %v2530_v60  ;;  %2290 = vrot.lane.b32.xlu1 %v2260_v48, %s2962_s9  ;;  %v2227_v16 = vadd.f32 %v2609_v13, %v2082_v28 }
 0x309   :  { %v2087_v54 = vadd.f32 %v2532_v57, %v4306_v33  ;;  %v2533_v23 = vpop.f32.mrb[22].mxu1  ;;  %v2261_v35 = vmax.f32 %v2227_v16, 0.0 }
 0x30a   :  { %v2534_v25 = vpop.f32.mrb[23].mxu1 }
 0x30b   :  { %v2535_v19 = vadd.f32 %v2534_v25, %v2533_v23  ;;  %v2232_v62 = vadd.f32 %v2231_v34, %v2087_v54 }
 0x30d   :  { %v2092_v12 = vadd.f32 %v2535_v19, %v4306_v33  ;;  %v2536_v11 = vpop.f32.mrb[24].mxu1  ;;  %v2262_v20 = vmax.f32 %v2232_v62, 0.0  ;;  %v2350_v19 = vsub.s32 0, %v3089_v41 }
 0x30e   :  { %v2537_v52 = vpop.f32.mrb[25].mxu1 }
 0x30f   :  { %v2538_v63 = vadd.f32 %v2537_v52, %v2536_v11  ;;  %2302 = vrot.lane.b32.xlu1 %v2262_v20, %s2961_s28  ;;  %v2237_v17 = vadd.f32 %v2612_v22, %v2092_v12 }
 0x311   :  { %v2097_v53 = vadd.f32 %v2538_v63, %v4306_v33  ;;  %v2263_v15 = vmax.f32 %v2237_v17, 0.0 }
 0x312   :  { %v2539_v1 = vpop.f32.mrb[26].mxu1 }
 0x313   :  { %v2540_v13 = vpop.f32.mrb[27].mxu1  ;;  %2304 = vrot.lane.b32.xlu0 %v2263_v15, %s2961_s28  ;;  %v2242_v37 = vadd.f32 %v2241_v27, %v2097_v53 }
 0x314   :  { %v2541_v24 = vadd.f32 %v2540_v13, %v2539_v1 }
 0x315   :  { %v2264_v34 = vmax.f32 %v2242_v37, 0.0 }
 0x316   :  { %v2102_v51 = vadd.f32 %v2541_v24, %v4306_v33  ;;  %v2251_v33 = vmax.f32 %v4310_v36, 0.0 }
 0x317   :  { %2306 = vrot.lane.b32.xlu1 %v2264_v34, %s2961_s28  ;;  %2292 = vrot.lane.b32.xlu0 %v2261_v35, %s2962_s9 }
 0x318   :  { %v2247_v5 = vadd.f32 %v4325_v38, %v2102_v51 }
 0x31a   :  { %v2265_v22 = vmax.f32 %v2247_v5, 0.0 }
 0x31c   :  { %2308 = vrot.lane.b32.xlu1 %v2265_v22, %s2961_s28  ;;  %s2965_s28 = smov 16  }
 0x351   :  { %v2271_v31 = vpop.permute.xlu0 %2270 }
 0x352   :  { %v2314_v3 = vsel %vm1771_vm10, %v2250_v6, %v2271_v31 }
 0x35d   :  { %v2273_v47 = vpop.permute.xlu1 %2272 }
 0x35e   :  { %v2315_v38 = vsel %vm1771_vm10, %v2251_v33, %v2273_v47 }
 0x36d   :  { %v2277_v49 = vpop.permute.xlu0 %2276 }
 0x36e   :  { %v2317_v29 = vsel %vm1771_vm10, %v2253_v42, %v2277_v49 }
 0x371   :  { %v2275_v55 = vpop.permute.xlu0 %2274 }
 0x372   :  { %v2316_v46 = vsel %vm1771_vm10, %v2252_v59, %v2275_v55  ;;  %v2382_v59 = vld [vmem:[%s4396_s5] sm:$0x1] }
 0x375   :  { %v2289_v56 = vpop.permute.xlu1 %2288  ;;  %v2287_v50 = vpop.permute.xlu0 %2286 }
 0x376   :  { %v2319_v30 = vsel %vm46_vm0, %v2315_v38, %v2289_v56  ;;  %v2318_v40 = vsel %vm46_vm0, %v2314_v3, %v2287_v50 }
 0x379   :  { %v2291_v27 = vpop.permute.xlu1 %2290 }
 0x37a   :  { %v2320_v36 = vsel %vm46_vm0, %v2316_v46, %v2291_v27  ;;  %v2449_v46 = vld [vmem:[%s4397_s6] ss:$0 sm:$0xff] }
 0x381   :  { %v2303_v10 = vpop.permute.xlu1 %2302 }
 0x382   :  { %v2322_v9 = vsel %vm1804_vm2, %v2318_v40, %v2303_v10 }
 0x385   :  { %v2305_v14 = vpop.permute.xlu0 %2304 }
 0x386   :  { %v2323_v4 = vsel %vm1804_vm2, %v2319_v30, %v2305_v14 }
 0x387   :  { %v2326_v8 = vadd.f32 %v2323_v4, %v2322_v9 }
 0x389   :  { %v2307_v39 = vpop.permute.xlu1 %2306  ;;  %v2293_v45 = vpop.permute.xlu0 %2292 }
 0x38a   :  { %v2324_v61 = vsel %vm1804_vm2, %v2320_v36, %v2307_v39  ;;  %v2321_v0 = vsel %vm46_vm0, %v2317_v29, %v2293_v45 }
 0x38b   :  { %v2327_v2 = vadd.f32 %v2326_v8, %v2324_v61 }
 0x38e   :  { %v2309_v43 = vpop.permute.xlu1 %2308 }
 0x38f   :  { %v2325_v18 = vsel %vm1804_vm2, %v2321_v0, %v2309_v43 }
 0x390   :  { %v2328_v26 = vadd.f32 %v2327_v2, %v2325_v18 }
 0x392   :  { %v2329_v21 = vrot.slane %v2328_v26, 4 }
 0x394   :  { %v2330_v58 = vadd.f32 %v2329_v21, %v2328_v26 }
 0x396   :  { %v2331_v7 = vrot.slane %v2330_v58, 2 }
 0x398   :  { %v2332_v28 = vadd.f32 %v2331_v7, %v2330_v58 }
 0x39a   :  { %v2333_v44 = vrot.slane %v2332_v28, 1 }
 0x39c   :  { %v2334_v60 = vadd.f32 %v2333_v44, %v2332_v28 }
 0x39e   :  { %2335 = vrot.lane.b32.xlu0 %v2334_v60, %s2964_s4 }
 0x410   :  { %v2336_v48 = vpop.permute.xlu0 %2335 }
 0x411   :  { %v2337_v32 = vadd.f32 %v2336_v48, %v2334_v60 }
 0x413   :  { %2338 = vrot.lane.b32.xlu1 %v2337_v32, %s2965_s28 }
 0x485   :  { %v2339_v57 = vpop.permute.xlu1 %2338 }
 0x486   :  { %v2340_v16 = vadd.f32 %v2339_v57, %v2337_v32 }
 0x488   :  { %2341 = vrot.lane.b32.xlu0 %v2340_v16, %s2963_s10 }
 0x4fa   :  { %v2342_v54 = vpop.permute.xlu0 %2341 }
 0x4fb   :  { %v2343_v23 = vadd.f32 %v2342_v54, %v2340_v16 }
 0x4fd   :  { %2344 = vrot.lane.b32.xlu1 %v2343_v23, %s2962_s9 }
 0x56f   :  { %v2345_v25 = vpop.permute.xlu1 %2344 }
 0x570   :  { %v2346_v62 = vadd.f32 %v2345_v25, %v2343_v23 }
 0x572   :  { %v2347_v12 = vmul.f32 0.001953125, %v2346_v62 }
 0x574   :  { %v2351_v11 = vrot.slane %v2347_v12, %v2350_v19 }
 0x576   :  { %v2352_v20 = vsub.f32 %v2322_v9, %v2351_v11  ;;  %v2353_v52 = vsub.f32 %v2323_v4, %v2351_v11  ;;  %v2354_v63 = vsub.f32 %v2324_v61, %v2351_v11  ;;  %v2355_v17 = vsub.f32 %v2325_v18, %v2351_v11 }
 0x578   :  { %v2356_v53 = vmul.f32 %v2352_v20, %v2352_v20  ;;  %v2357_v1 = vmul.f32 %v2353_v52, %v2353_v52  ;;  %v2358_v15 = vmul.f32 %v2354_v63, %v2354_v63  ;;  %v2359_v24 = vmul.f32 %v2355_v17, %v2355_v17 }
 0x57a   :  { %v2360_v13 = vadd.f32 %v2357_v1, %v2356_v53 }
 0x57c   :  { %v2361_v37 = vadd.f32 %v2360_v13, %v2358_v15 }
 0x57e   :  { %v2362_v51 = vadd.f32 %v2361_v37, %v2359_v24 }
 0x580   :  { %v2363_v34 = vrot.slane %v2362_v51, 4 }
 0x582   :  { %v2364_v35 = vadd.f32 %v2363_v34, %v2362_v51 }
 0x584   :  { %v2365_v5 = vrot.slane %v2364_v35, 2 }
 0x586   :  { %v2366_v22 = vadd.f32 %v2365_v5, %v2364_v35 }
 0x588   :  { %v2367_v31 = vrot.slane %v2366_v22, 1 }
 0x58a   :  { %v2368_v41 = vadd.f32 %v2367_v31, %v2366_v22 }
 0x58c   :  { %2369 = vrot.lane.b32.xlu0 %v2368_v41, %s2964_s4 }
 0x5fe   :  { %v2370_v49 = vpop.permute.xlu0 %2369 }
 0x5ff   :  { %v2371_v47 = vadd.f32 %v2370_v49, %v2368_v41 }
 0x601   :  { %2372 = vrot.lane.b32.xlu1 %v2371_v47, %s2965_s28 }
 0x673   :  { %v2373_v55 = vpop.permute.xlu1 %2372 }
 0x674   :  { %v2374_v56 = vadd.f32 %v2373_v55, %v2371_v47 }
 0x676   :  { %2375 = vrot.lane.b32.xlu0 %v2374_v56, %s2963_s10  ;;  %s2966_s10 = smov [#allocation2]  }
 0x677   :  { %s2416_s0 = sshll.u32 %s2966_s10, 4  ;;  %s2417_s0 = int_to_ptr.vmem [resolvable:$true] %s2416_s0 }
 0x678   :  { %s2937_s5 = scalar_lea.vmem %s2417_s0, 512  ;;  %p2942_p1 = scmp.lt.s32.totalorder %s2417_s0, %s2417_s0 }
 0x679   :  { %p2938_p0 = scmp.ne.s32.totalorder %s2417_s0, %s2937_s5  ;;  %p2943_p2 = scmp.lt.s32.totalorder %s2937_s5, %s2937_s5 }
 0x67b   :  { %p2944_p3 = por %p2943_p2, %p2942_p1 }
 0x67d   :  { %p2945_p4 = pnand %p2944_p3, %p2938_p0 }
 0x6e8   :  { %v2376_v50 = vpop.permute.xlu0 %2375 }
 0x6e9   :  { %v2377_v27 = vadd.f32 %v2376_v50, %v2374_v56 }
 0x6eb   :  { %2378 = vrot.lane.b32.xlu1 %v2377_v27, %s2962_s9 }
 0x75d   :  { %v2379_v33 = vpop.permute.xlu1 %2378 }
 0x75e   :  { %v2380_v10 = vadd.f32 %v2379_v33, %v2377_v27 }
 0x760   :  { %v2381_v14 = vmul.f32 0.001953125, %v2380_v10 }
 0x762   :  { %v2383_v6 = vadd.f32 1e-05, %v2381_v14 }
 0x764   :  { %2935 = vrsqrt.f32 %v2383_v6 }
 0x76e   :  { %v2936_v38 = vpop.eup %2935 }
 0x76f   :  { %v2385_v30 = vmul.f32 %v2936_v38, %v2382_v59 }
 0x771   :  { %v2390_v3 = vrot.slane %v2385_v30, %v2350_v19 }
 0x773   :  { %v2392_v4 = vmul.f32 %v2390_v3, %v2352_v20  ;;  %v2393_v40 = vmul.f32 %v2390_v3, %v2353_v52  ;;  %v2394_v36 = vmul.f32 %v2390_v3, %v2354_v63  ;;  %v2395_v39 = vmul.f32 %v2390_v3, %v2355_v17 }
 0x775   :  { %v2403_v42 = vadd.f32 %v2449_v46, %v2392_v4  ;;  %v2404_v9 = vadd.f32 %v2449_v46, %v2393_v40  ;;  %v2405_v61 = vadd.f32 %v2449_v46, %v2394_v36  ;;  %v2406_v45 = vadd.f32 %v2449_v46, %v2395_v39 }
 0x777   :  { %2407 = vst [vmem:[#allocation2] sm:$0xff] %v2403_v42  ;;  %2408 = vst [vmem:[#allocation2 + $0x8] sm:$0xff] %v2404_v9 }
 0x778   :  { %2409 = vst [vmem:[#allocation2 + $0x10] sm:$0xff] %v2405_v61  ;;  %2410 = vst [vmem:[#allocation2 + $0x18] sm:$0xff] %v2406_v45 }
 0x779   :  { %2948 = shalt.err (!%p2945_p4)
}
 0x77a   :  { %s2949_s11 = scalar_lea.hbm %s4398_s7, 512 }
 0x77b   :  { %p2950_p5 = scmp.ne.s32.totalorder %s4398_s7, %s2949_s11  ;;  %p2953_p6 = scmp.lt.u32.totalorder %s2949_s11, %s4398_s7 }
 0x77d   :  { %p2955_p7 = pnand %p2953_p6, %p2950_p5 }
 0x77f   :  { %2958 = shalt.err (!%p2955_p7)
}
 0x780   :  { %s2967_s16 = smov 128  }
 0x781   :  { %2422 = dma.vmem_to_hbm [thread:$0]  %s2417_s0, 512, %s4398_s7, [#allocation3], %s2967_s16, %s2967_s16, %s2964_s4  }
 0x782   :  { %2959 = dma.done.wait [#allocation3], 512  }
 0x783   :  { %2960 = vsyncadd [#allocation3], 4294966784 }
 0x784   :  { %2426 = vsyncpa [#allocation3], 1 }

</bundles_post_ra>
